<compile_context>
chip_gen: v7x
topology: tpu7x:2x2x1
jax: 0.10.0
libtpu: 0.0.40
codegen_flags: <defaults>
</compile_context>

<pallas_src>
import math

import jax
import jax.numpy as jnp
import numpy as np
from jax import lax
from jax.experimental import pallas as pl
from jax.experimental.pallas import tpu as pltpu


# ------------------------------ Pallas kernel -------------------------------

def _encoder2_kernel(p1_ref, w1_ref, b1_ref, m2_ref, b2_ref, o_ref):
    """Whole Encoder2 forward for one block of Bb images.

    p1_ref : (4, Bb, P1*9)  conv1 patches, leading dim = pool1 window slot
    w1_ref : (P1*9, P1*16)  block-diagonal conv1 weights (pixel-blocked)
    b1_ref : (1, P1*16)     conv1 bias tiled over pixels
    m2_ref : (P1*16, 4*P3*8) fused conv2 selector(x)weight with pool2 window dup
    b2_ref : (1, 4*P3*8)    conv2 bias tiled over (window, pixel)
    o_ref  : (Bb//4, 128)   lane-dense output, 4 images packed per row
    """
    nslots, bb, kdim = p1_ref.shape
    q = bb // 4

    b1 = b1_ref[...]                                    # (1, 400)
    b2 = b2_ref[...]                                    # (1, 128)

    # conv1 + bias + ReLU for all 4 pool1 slots as one MXU matmul.
    p1 = p1_ref[...].reshape(nslots * bb, kdim)         # (4*Bb, 225)
    y1 = jnp.dot(p1, w1_ref[...], preferred_element_type=jnp.float32)
    y1 = jnp.maximum(y1 + b1, 0.0)                      # (4*Bb, 400)

    # MaxPool2d(2, stride=2): slot-major row blocks -> elementwise max (VPU).
    y2 = jnp.maximum(jnp.maximum(y1[0 * bb:1 * bb], y1[1 * bb:2 * bb]),
                     jnp.maximum(y1[2 * bb:3 * bb], y1[3 * bb:4 * bb]))  # (Bb, 400)

    # conv2 (pad 1, stride 2) + bias + ReLU as one fused K=400 matmul; the
    # pool2 window duplication is baked into m2's 128 output columns.
    y3 = jnp.dot(y2, m2_ref[...], preferred_element_type=jnp.float32)
    y3 = jnp.maximum(y3 + b2, 0.0)                      # (Bb, 128)

    # MaxPool2d(2, stride=1): max over the 4 duplicated 32-lane column groups.
    gw = y3.shape[1] // 4
    y4 = jnp.maximum(jnp.maximum(y3[:, 0 * gw:1 * gw], y3[:, 1 * gw:2 * gw]),
                     jnp.maximum(y3[:, 2 * gw:3 * gw], y3[:, 3 * gw:4 * gw]))

    # Pack 4 images per 128-lane row so the store is a full-width vst.
    o_ref[...] = jnp.concatenate(
        [y4[0 * q:1 * q], y4[1 * q:2 * q], y4[2 * q:3 * q], y4[3 * q:4 * q]],
        axis=1).astype(o_ref.dtype)


# --------------------------- constant selector masks -------------------------

def _pool2_dup_selectors(h2, w2, h4, w4):
    """sel[tap, outdup, p] = 1 where conv2 tap (kh*3+kw) evaluated at the
    duplicated output position outdup = (2dh+dw)*(h4*w4) + qh*w4 + qw (i.e.
    conv2 output (qh+dh, qw+dw)) reads interior pool1 pixel p = ih*w2 + iw.
    Taps landing in the zero padding stay all-zero (== zero pad)."""
    sel = np.zeros((9, 4 * h4 * w4, h2 * w2), np.float32)
    for dh in range(2):
        for dw in range(2):
            for qh in range(h4):
                for qw in range(w4):
                    oh, ow = qh + dh, qw + dw
                    od = (2 * dh + dw) * (h4 * w4) + qh * w4 + qw
                    for kh in range(3):
                        for kw in range(3):
                            ih = 2 * oh + kh - 1
                            iw = 2 * ow + kw - 1
                            if 0 <= ih < h2 and 0 <= iw < w2:
                                sel[kh * 3 + kw, od, ih * w2 + iw] = 1.0
    return sel


def _round_up(a, m):
    return (a + m - 1) // m * m


# ------------------------------- forward pass --------------------------------

@jax.jit
def encoder2_forward(x_nchw, w1, b1, w2, b2):
    n, cin, h, w = x_nchw.shape
    assert cin == 1
    hp, wp = h + 2, w + 2
    assert hp % 3 == 0 and wp % 3 == 0          # conv1 stride==kernel exact tiling
    h1, w1o = hp // 3, wp // 3                  # conv1 out (10, 10 for 28x28)
    assert h1 % 2 == 0 and w1o % 2 == 0         # pool1 2x2/stride-2 exact cover
    h2, w2o = h1 // 2, w1o // 2                 # pool1 out (5, 5)
    h3, w3o = (h2 - 1) // 2 + 1, (w2o - 1) // 2 + 1   # conv2 out (3, 3)
    h4, w4o = h3 - 1, w3o - 1                   # pool2 out (2, 2)
    p1n = h2 * w2o                              # 25
    kdim = p1n * 9                              # 225
    c1dim = p1n * 16                            # 400
    odim = 4 * h4 * w4o * 8                     # 128
    pervals = h4 * w4o * 8                      # 32 values per image

    # Batch blocking: Bb images per grid step (multiple of 32 so that both the
    # batch sublane dim and the 4-image output packing stay 8-aligned).
    n_pad = _round_up(max(n, 1), 32)
    bb = min(256, n_pad)
    n_pad = _round_up(n_pad, bb)
    grid_n = n_pad // bb
    q = bb // 4

    xb = x_nchw
    if n_pad != n:
        xb = jnp.pad(xb, ((0, n_pad - n), (0, 0), (0, 0), (0, 0)))

    # conv1 patches, slot-major: p1[2dh+dw, n, (ph*w2o+pw)*9 + kh*3+kw]
    #   = xpad[n, 3*(2ph+dh)+kh, 3*(2pw+dw)+kw]
    xp = jnp.pad(xb.reshape(n_pad, h, w), ((0, 0), (1, 1), (1, 1)))
    pat = xp.reshape(n_pad, h2, 2, 3, w2o, 2, 3)        # n, ph, dh, kh, pw, dw, kw
    p1 = pat.transpose(2, 5, 0, 1, 4, 3, 6).reshape(4, n_pad, kdim)

    # conv1 weights as a block-diagonal (225, 400) matrix (pixel-blocked).
    w1m = jnp.transpose(w1, (2, 3, 1, 0)).reshape(9, 16)           # (tap, cout)
    w1big = jnp.kron(jnp.eye(p1n, dtype=w1m.dtype), w1m)           # (225, 400)
    b1big = jnp.tile(b1, p1n).reshape(1, c1dim)                    # (1, 400)

    # Fused conv2 selector (x) weight matrix with pool2 window duplication.
    w2t = jnp.transpose(w2, (2, 3, 1, 0)).reshape(9, 16, 8)        # (tap, cin, cout)
    sel = jnp.asarray(_pool2_dup_selectors(h2, w2o, h4, w4o))      # (9, 16, 25)
    m2 = jnp.einsum('top,tic->pioc', sel, w2t).reshape(c1dim, odim)  # (400, 128)
    b2dup = jnp.tile(b2, 4 * h4 * w4o).reshape(1, odim)            # (1, 128)

    flops = n_pad * 2 * (4 * kdim * c1dim + c1dim * odim)
    bytes_accessed = 4 * (p1.size + w1big.size + b1big.size + m2.size
                          + b2dup.size + n_pad * pervals)

    out = pl.pallas_call(
        _encoder2_kernel,
        out_shape=jax.ShapeDtypeStruct((grid_n * q, 128), jnp.float32),
        grid=(grid_n,),
        in_specs=[
            pl.BlockSpec((4, bb, kdim), lambda i: (0, i, 0)),
            pl.BlockSpec((kdim, c1dim), lambda i: (0, 0)),
            pl.BlockSpec((1, c1dim), lambda i: (0, 0)),
            pl.BlockSpec((c1dim, odim), lambda i: (0, 0)),
            pl.BlockSpec((1, odim), lambda i: (0, 0)),
        ],
        out_specs=pl.BlockSpec((q, 128), lambda i: (i, 0)),
        compiler_params=pltpu.CompilerParams(
            dimension_semantics=("parallel",)),
        cost_estimate=pl.CostEstimate(flops=int(flops), transcendentals=0,
                                      bytes_accessed=int(bytes_accessed)),
    )(p1, w1big, b1big, m2, b2dup)

    # Unscramble the 4-images-per-row packing, drop batch padding, go to NCHW.
    out = out.reshape(grid_n, q, 4, pervals).transpose(0, 2, 1, 3)
    out = out.reshape(n_pad, h4, w4o, 8)[:n]
    return out.transpose(0, 3, 1, 2)


# --------------------------- pure-XLA reference ------------------------------

def encoder2_reference(x_nchw, w1, b1, w2, b2):
    def conv(x, w, b, stride):
        y = lax.conv_general_dilated(x, w, (stride, stride), [(1, 1), (1, 1)],
                                     dimension_numbers=('NCHW', 'OIHW', 'NCHW'))
        return jnp.maximum(y + b.reshape(1, -1, 1, 1), 0.0)

    def maxpool(x, stride):
        return lax.reduce_window(x, -jnp.inf, lax.max,
                                 (1, 1, 2, 2), (1, 1, stride, stride), 'VALID')

    y = maxpool(conv(x_nchw, w1, b1, 3), 2)
    y = maxpool(conv(y, w2, b2, 2), 1)
    return y


# --------------------------------- main --------------------------------------

if __name__ == "__main__":
    key = jax.random.PRNGKey(0)
    kx, k1, k2, k3, k4 = jax.random.split(key, 5)

    # Deterministic synthetic parameters (PyTorch conv weight layout OIHW).
    fan1 = 1 * 3 * 3
    w1 = jax.random.normal(k1, (16, 1, 3, 3), jnp.float32) / math.sqrt(fan1)
    b1 = jax.random.normal(k2, (16,), jnp.float32) * 0.1
    fan2 = 16 * 3 * 3
    w2 = jax.random.normal(k3, (8, 16, 3, 3), jnp.float32) / math.sqrt(fan2)
    b2 = jax.random.normal(k4, (8,), jnp.float32) * 0.1

    # Input: batch=2, single channel, 28x28 (MNIST-like, matches Conv2d(1, ...)).
    x = jax.random.normal(kx, (2, 1, 28, 28), jnp.float32)

    out = jax.block_until_ready(encoder2_forward(x, w1, b1, w2, b2))
    ref = jax.block_until_ready(encoder2_reference(x, w1, b1, w2, b2))

    assert out.shape == (2, 8, 2, 2), out.shape
    assert out.dtype == jnp.float32
    assert jnp.allclose(out, ref, atol=1e-4, rtol=1e-4), \
        float(jnp.max(jnp.abs(out - ref)))

    print("KERNEL_OK")
</pallas_src>

<mosaic_0001>
module attributes {stable_mosaic.version = 11 : i64} {
  func.func @_encoder2_kernel(%arg0: i32, %arg1: memref<4x32x225xf32, #tpu.memory_space<vmem>>, %arg2: memref<225x400xf32, #tpu.memory_space<vmem>>, %arg3: memref<1x400xf32, #tpu.memory_space<vmem>>, %arg4: memref<400x128xf32, #tpu.memory_space<vmem>>, %arg5: memref<1x128xf32, #tpu.memory_space<vmem>>, %arg6: memref<8x128xf32, #tpu.memory_space<vmem>>) attributes {dimension_semantics = [#tpu.dimension_semantics<parallel>], iteration_bounds = array<i64: 1>, scalar_prefetch = 0 : i64, scratch_operands = 0 : i64, tpu.core_type = #tpu.core_type<tc>, window_params = [{transform_indices = @transform_0, window_bounds = array<i64: 4, 32, 225>}, {pipeline_mode = #tpu.pipeline_mode<synchronous>, transform_indices = @transform_1, window_bounds = array<i64: 225, 400>}, {pipeline_mode = #tpu.pipeline_mode<synchronous>, transform_indices = @transform_2, window_bounds = array<i64: 1, 400>}, {pipeline_mode = #tpu.pipeline_mode<synchronous>, transform_indices = @transform_3, window_bounds = array<i64: 400, 128>}, {pipeline_mode = #tpu.pipeline_mode<synchronous>, transform_indices = @transform_4, window_bounds = array<i64: 1, 128>}, {transform_indices = @transform_5, window_bounds = array<i64: 8, 128>}]} {
    %c0 = arith.constant 0 : index
    %c0_0 = arith.constant 0 : index
    %0 = vector.load %arg3[%c0, %c0_0] : memref<1x400xf32, #tpu.memory_space<vmem>>, vector<1x400xf32>
    %c0_1 = arith.constant 0 : index
    %c0_2 = arith.constant 0 : index
    %1 = vector.load %arg5[%c0_1, %c0_2] : memref<1x128xf32, #tpu.memory_space<vmem>>, vector<1x128xf32>
    %c0_3 = arith.constant 0 : index
    %c0_4 = arith.constant 0 : index
    %c0_5 = arith.constant 0 : index
    %2 = vector.load %arg1[%c0_3, %c0_4, %c0_5] : memref<4x32x225xf32, #tpu.memory_space<vmem>>, vector<4x32x225xf32>
    %3 = vector.shape_cast %2 : vector<4x32x225xf32> to vector<128x225xf32>
    %c0_6 = arith.constant 0 : index
    %c0_7 = arith.constant 0 : index
    %4 = vector.load %arg2[%c0_6, %c0_7] : memref<225x400xf32, #tpu.memory_space<vmem>>, vector<225x400xf32>
    %cst = arith.constant dense<0.000000e+00> : vector<128x400xf32>
    %5 = tpu.matmul %3, %4, %cst {dimension_numbers = #tpu.dot_dimension_numbers<[1], [0], [0], [1], [0, 0, 1, 1], [], []>} : vector<128x225xf32>, vector<225x400xf32>, vector<128x400xf32> -> vector<128x400xf32>
    %6 = vector.broadcast %0 : vector<1x400xf32> to vector<128x400xf32>
    %7 = arith.addf %5, %6 : vector<128x400xf32>
    %cst_8 = arith.constant 0.000000e+00 : f32
    %8 = vector.broadcast %cst_8 : f32 to vector<128x400xf32>
    %9 = arith.maximumf %7, %8 : vector<128x400xf32>
    %10 = vector.extract_strided_slice %9 {offsets = [0, 0], sizes = [32, 400], strides = [1, 1]} : vector<128x400xf32> to vector<32x400xf32>
    %11 = vector.extract_strided_slice %9 {offsets = [32, 0], sizes = [32, 400], strides = [1, 1]} : vector<128x400xf32> to vector<32x400xf32>
    %12 = arith.maximumf %10, %11 : vector<32x400xf32>
    %13 = vector.extract_strided_slice %9 {offsets = [64, 0], sizes = [32, 400], strides = [1, 1]} : vector<128x400xf32> to vector<32x400xf32>
    %14 = vector.extract_strided_slice %9 {offsets = [96, 0], sizes = [32, 400], strides = [1, 1]} : vector<128x400xf32> to vector<32x400xf32>
    %15 = arith.maximumf %13, %14 : vector<32x400xf32>
    %16 = arith.maximumf %12, %15 : vector<32x400xf32>
    %c0_9 = arith.constant 0 : index
    %c0_10 = arith.constant 0 : index
    %17 = vector.load %arg4[%c0_9, %c0_10] : memref<400x128xf32, #tpu.memory_space<vmem>>, vector<400x128xf32>
    %cst_11 = arith.constant dense<0.000000e+00> : vector<32x128xf32>
    %18 = tpu.matmul %16, %17, %cst_11 {dimension_numbers = #tpu.dot_dimension_numbers<[1], [0], [0], [1], [0, 0, 1, 1], [], []>} : vector<32x400xf32>, vector<400x128xf32>, vector<32x128xf32> -> vector<32x128xf32>
    %19 = vector.broadcast %1 : vector<1x128xf32> to vector<32x128xf32>
    %20 = arith.addf %18, %19 : vector<32x128xf32>
    %cst_12 = arith.constant 0.000000e+00 : f32
    %21 = vector.broadcast %cst_12 : f32 to vector<32x128xf32>
    %22 = arith.maximumf %20, %21 : vector<32x128xf32>
    %23 = vector.extract_strided_slice %22 {offsets = [0, 0], sizes = [32, 32], strides = [1, 1]} : vector<32x128xf32> to vector<32x32xf32>
    %24 = vector.extract_strided_slice %22 {offsets = [0, 32], sizes = [32, 32], strides = [1, 1]} : vector<32x128xf32> to vector<32x32xf32>
    %25 = arith.maximumf %23, %24 : vector<32x32xf32>
    %26 = vector.extract_strided_slice %22 {offsets = [0, 64], sizes = [32, 32], strides = [1, 1]} : vector<32x128xf32> to vector<32x32xf32>
    %27 = vector.extract_strided_slice %22 {offsets = [0, 96], sizes = [32, 32], strides = [1, 1]} : vector<32x128xf32> to vector<32x32xf32>
    %28 = arith.maximumf %26, %27 : vector<32x32xf32>
    %29 = arith.maximumf %25, %28 : vector<32x32xf32>
    %30 = vector.extract_strided_slice %29 {offsets = [0, 0], sizes = [8, 32], strides = [1, 1]} : vector<32x32xf32> to vector<8x32xf32>
    %31 = vector.extract_strided_slice %29 {offsets = [8, 0], sizes = [8, 32], strides = [1, 1]} : vector<32x32xf32> to vector<8x32xf32>
    %32 = vector.extract_strided_slice %29 {offsets = [16, 0], sizes = [8, 32], strides = [1, 1]} : vector<32x32xf32> to vector<8x32xf32>
    %33 = vector.extract_strided_slice %29 {offsets = [24, 0], sizes = [8, 32], strides = [1, 1]} : vector<32x32xf32> to vector<8x32xf32>
    %34 = tpu.concatenate %30, %31, %32, %33 in 1 : vector<8x32xf32>, vector<8x32xf32>, vector<8x32xf32>, vector<8x32xf32> -> vector<8x128xf32>
    %c0_13 = arith.constant 0 : index
    %c0_14 = arith.constant 0 : index
    %35 = vector.load %arg6[%c0_13, %c0_14] : memref<8x128xf32, #tpu.memory_space<vmem>>, vector<8x128xf32>
    tpu.vector_store %arg6[%c0_13, %c0_14], %34 {strides = array<i32>} : memref<8x128xf32, #tpu.memory_space<vmem>>, vector<8x128xf32>,
    return
  }
  func.func @transform_0(%arg0: i32) -> (i32, i32, i32) {
    %c0_i32 = arith.constant 0 : i32
    %c0_i32_0 = arith.constant 0 : i32
    %c0_i32_1 = arith.constant 0 : i32
    return %c0_i32, %arg0, %c0_i32_0 : i32, i32, i32
  }
  func.func @transform_1(%arg0: i32) -> (i32, i32) {
    %c0_i32 = arith.constant 0 : i32
    %c0_i32_0 = arith.constant 0 : i32
    %c0_i32_1 = arith.constant 0 : i32
    return %c0_i32, %c0_i32_0 : i32, i32
  }
  func.func @transform_2(%arg0: i32) -> (i32, i32) {
    %c0_i32 = arith.constant 0 : i32
    %c0_i32_0 = arith.constant 0 : i32
    %c0_i32_1 = arith.constant 0 : i32
    return %c0_i32, %c0_i32_0 : i32, i32
  }
  func.func @transform_3(%arg0: i32) -> (i32, i32) {
    %c0_i32 = arith.constant 0 : i32
    %c0_i32_0 = arith.constant 0 : i32
    %c0_i32_1 = arith.constant 0 : i32
    return %c0_i32, %c0_i32_0 : i32, i32
  }
  func.func @transform_4(%arg0: i32) -> (i32, i32) {
    %c0_i32 = arith.constant 0 : i32
    %c0_i32_0 = arith.constant 0 : i32
    %c0_i32_1 = arith.constant 0 : i32
    return %c0_i32, %c0_i32_0 : i32, i32
  }
  func.func @transform_5(%arg0: i32) -> (i32, i32) {
    %c0_i32 = arith.constant 0 : i32
    %c0_i32_0 = arith.constant 0 : i32
    return %arg0, %c0_i32 : i32, i32
  }
}

</mosaic_0001>

<bundles_post_ra>
// kernel: mul.4
= control target key start
LH: loop header
LB: loop body
LE: loop exit
PB: predicated region body
PF: predicated region fallthrough
CT: control target
= control target key end

     0   :  { %vm16_vm0 = vcmask 130048   ;;  %s61_s0 = inlined_call_operand.vmem [shape: f32[3,3,16], index: 0, kind: input, shape index: {}]   ;;  %s62_s1 = inlined_call_operand.vmem [shape: f32[9,16], index: 1, kind: output, shape index: {}]  }
   0x1   :  { %v29_v0 = vld [vmem:[%s61_s0 + $0x8] sm:$0xf]  ;;  %v30_v1 = vld [vmem:[%s61_s0 + $0x4] sm:$0xf]  ;;  %v13_v2 = vld [vmem:[%s61_s0] sm:$0xf] }
   0x2   :  { %8 = vst [vmem:[#allocation0 + $0x10] sm:$0xf] %v29_v0  ;;  %12 = vst [vmem:[#allocation0 + $0x8] sm:$0xf] %v30_v1 }
   0x3   :  { %14 = vst [vmem:[#allocation0] sm:$0xf] %v13_v2 }
   0x9   :  { %v19_v4 = vld [vmem:[#allocation0 + $0x8] sm:$0x7]   ;;  %v24_v5 = vld [vmem:[#allocation0 + $0x10] sm:$0x7]  }
   0xa   :  { %v15_v3 = vld [vmem:[#allocation0] sm:$0x7]   ;;  %31 = vst.msk [vmem:[%s62_s1 + $0x3] sm:$0x7] %vm16_vm0, %v19_v4   ;;  %32 = vst.msk [vmem:[%s62_s1 + $0x6] sm:$0x7] %vm16_vm0, %v24_v5  }
   0xb   :  { %17 = vst.msk [vmem:[%s62_s1] sm:$0x7] %vm16_vm0, %v15_v3  }

// kernel: tile.13
= control target key start
LH: loop header
LB: loop body
LE: loop exit
PB: predicated region body
PF: predicated region fallthrough
CT: control target
= control target key end

     0   :  { %s40_s0 = inlined_call_operand.vmem [shape: f32[16], index: 0, kind: input, shape index: {}]   ;;  %s41_s1 = inlined_call_operand.vmem [shape: f32[25,16], index: 1, kind: output, shape index: {}]  }
   0x1   :  { %v4_v0 = vld [vmem:[%s40_s0] ss:$0 sm:$0xff] }
   0x2   :  { %5 = vst [vmem:[%s41_s1] sm:$0xff] %v4_v0  ;;  %12 = vst [vmem:[%s41_s1 + $0x8] sm:$0xff] %v4_v0 }
   0x3   :  { %13 = vst [vmem:[%s41_s1 + $0x10] sm:$0xff] %v4_v0  ;;  %14 = vst [vmem:[%s41_s1 + $0x18] sm:$0xff] %v4_v0 }

// kernel: tile.14
= control target key start
LH: loop header
LB: loop body
LE: loop exit
PB: predicated region body
PF: predicated region fallthrough
CT: control target
= control target key end

     0   :  { %s89_s8 = smov 112   ;;  %s90_s11 = smov 80   ;;  %vm3_vm0 = vcmask 130048   ;;  %vm9_vm1 = vcmask 1048448   ;;  %vm15_vm2 = vcmask 917248   ;;  %vm21_vm3 = vcmask 786048   ;;  %s142_s0 = inlined_call_operand.vmem [shape: f32[25,16], index: 0, kind: input, shape index: {}]   ;;  %s143_s1 = inlined_call_operand.vmem [shape: f32[1,400], index: 1, kind: output, shape index: {}]  }
   0x1   :  { %v72_v0 = vld [vmem:[%s142_s0 + $0x7] ss:$8 sm:$0x7]   ;;  %v74_v1 = vld [vmem:[%s142_s0 + $0x5] ss:$8 sm:$0x7]  }
   0x2   :  { %7 = vrot.lane.b32.xlu0 %v72_v0, %s89_s8  ;;  %19 = vrot.lane.b32.xlu1 %v74_v1, %s90_s11  ;;  %v73_v2 = vld [vmem:[%s142_s0 + $0x6] ss:$8 sm:$0x7]   ;;  %v75_v3 = vld [vmem:[%s142_s0 + $0x4] ss:$8 sm:$0x7]  }
   0x3   :  { %s91_s16 = smov 96   ;;  %v2_v4 = vld [vmem:[%s142_s0] ss:$8 sm:$0xf]   ;;  %s92_s19 = smov 64   ;;  %vm27_vm4 = vcmask 654848  }
   0x4   :  { %v76_v5 = vld [vmem:[%s142_s0 + $0x3] ss:$8 sm:$0x7]   ;;  %4 = vst.msk [vmem:[#allocation0] ss:$8 sm:$0xf] %vm3_vm0, %v2_v4  }
   0x5   :  { %v77_v6 = vld [vmem:[%s142_s0 + $0x2] ss:$8 sm:$0x7]   ;;  %s93_s24 = smov 48   ;;  %s94_s25 = smov 32   ;;  %vm33_vm5 = vcmask 523648  }
   0x6   :  { %13 = vrot.lane.b32.xlu0 %v73_v2, %s91_s16  ;;  %25 = vrot.lane.b32.xlu1 %v75_v3, %s92_s19  ;;  %v78_v7 = vld [vmem:[%s142_s0 + $0x1] ss:$8 sm:$0x7]   ;;  %s95_s0 = smov 16   ;;  %vm39_vm6 = vcmask 392448   ;;  %vm45_vm7 = vcmask 261248  }
   0xa   :  { %31 = vrot.lane.b32.xlu0 %v76_v5, %s93_s24  ;;  %37 = vrot.lane.b32.xlu1 %v77_v6, %s94_s25 }
   0xb   :  { %v65_v8 = vld [vmem:[#allocation0 + $0x18] sm:$0x1] }
   0xc   :  { %81 = vst [vmem:[%s143_s1 + $0x3] sm:$0x1] %v65_v8 }
   0xe   :  { %43 = vrot.lane.b32.xlu0 %v78_v7, %s95_s0 }
  0x74   :  { %v8_v9 = vpop.permute.xlu0 %7   ;;  %v20_v10 = vpop.permute.xlu1 %19  }
  0x75   :  { %10 = vst.msk [vmem:[#allocation0] ss:$8 sm:$0x7] %vm9_vm1, %v8_v9  }
  0x78   :  { %v14_v11 = vpop.permute.xlu0 %13   ;;  %v26_v12 = vpop.permute.xlu1 %25  }
  0x79   :  { %16 = vst.msk [vmem:[#allocation0] ss:$8 sm:$0x7] %vm15_vm2, %v14_v11  }
  0x7a   :  { %22 = vst.msk [vmem:[#allocation0] ss:$8 sm:$0x7] %vm21_vm3, %v20_v10  }
  0x7b   :  { %28 = vst.msk [vmem:[#allocation0] ss:$8 sm:$0x7] %vm27_vm4, %v26_v12  }
  0x7c   :  { %v32_v13 = vpop.permute.xlu0 %31   ;;  %v38_v14 = vpop.permute.xlu1 %37  }
  0x7d   :  { %34 = vst.msk [vmem:[#allocation0] ss:$8 sm:$0x7] %vm33_vm5, %v32_v13  }
  0x7e   :  { %40 = vst.msk [vmem:[#allocation0] ss:$8 sm:$0x7] %vm39_vm6, %v38_v14  }
  0x80   :  { %v44_v15 = vpop.permute.xlu0 %43  }
  0x81   :  { %46 = vst.msk [vmem:[#allocation0] ss:$8 sm:$0x7] %vm45_vm7, %v44_v15  }
  0x88   :  { %v50_v16 = vld [vmem:[#allocation0] sm:$0x1]  ;;  %v54_v17 = vld [vmem:[#allocation0 + $0x8] sm:$0x1]  ;;  %v59_v18 = vld [vmem:[#allocation0 + $0x10] sm:$0x1] }
  0x89   :  { %52 = vst [vmem:[%s143_s1] sm:$0x1] %v50_v16  ;;  %79 = vst [vmem:[%s143_s1 + $0x1] sm:$0x1] %v54_v17 }
  0x8a   :  { %80 = vst [vmem:[%s143_s1 + $0x2] sm:$0x1] %v59_v18 }

// kernel: tile.18
= control target key start
LH: loop header
LB: loop body
LE: loop exit
PB: predicated region body
PF: predicated region fallthrough
CT: control target
= control target key end

     0   :  { %s28_s0 = inlined_call_operand.vmem [shape: f32[8], index: 0, kind: input, shape index: {}]   ;;  %s29_s1 = inlined_call_operand.vmem [shape: f32[16,8], index: 1, kind: output, shape index: {}]  }
   0x1   :  { %v4_v0 = vld [vmem:[%s28_s0] ss:$0 sm:$0xff] }
   0x2   :  { %5 = vst [vmem:[%s29_s1] sm:$0xff] %v4_v0  ;;  %8 = vst [vmem:[%s29_s1 + $0x8] sm:$0xff] %v4_v0 }

// kernel: tile.19
= control target key start
LH: loop header
LB: loop body
LE: loop exit
PB: predicated region body
PF: predicated region fallthrough
CT: control target
= control target key end

     0   :  { %s131_s10 = smov 120   ;;  %s132_s11 = smov 104   ;;  %vm3_vm0 = vcmask 64512   ;;  %vm9_vm1 = vcmask 1048512   ;;  %vm15_vm2 = vcmask 982912   ;;  %vm21_vm3 = vcmask 917312   ;;  %s207_s0 = inlined_call_operand.vmem [shape: f32[16,8], index: 0, kind: input, shape index: {}]   ;;  %s208_s1 = inlined_call_operand.vmem [shape: f32[1,128], index: 1, kind: output, shape index: {}]  }
   0x1   :  { %v101_v0 = vld [vmem:[%s207_s0 + $0xf] sm:$0x1]   ;;  %v103_v1 = vld [vmem:[%s207_s0 + $0xd] sm:$0x1]   ;;  %v102_v2 = vld [vmem:[%s207_s0 + $0xe] sm:$0x1]  }
   0x2   :  { %7 = vrot.lane.b32.xlu0 %v101_v0, %s131_s10  ;;  %19 = vrot.lane.b32.xlu1 %v103_v1, %s132_s11  ;;  %v104_v3 = vld [vmem:[%s207_s0 + $0xc] sm:$0x1]   ;;  %s133_s16 = smov 112   ;;  %s134_s17 = smov 96   ;;  %v105_v4 = vld [vmem:[%s207_s0 + $0xb] sm:$0x1]  }
   0x3   :  { %v106_v5 = vld [vmem:[%s207_s0 + $0xa] sm:$0x1]   ;;  %v2_v6 = vld [vmem:[%s207_s0] sm:$0x1]   ;;  %s135_s24 = smov 88   ;;  %s136_s25 = smov 80  }
   0x4   :  { %4 = vst.msk [vmem:[#allocation0] sm:$0x1] %vm3_vm0, %v2_v6   ;;  %v107_v7 = vld [vmem:[%s207_s0 + $0x9] sm:$0x1]   ;;  %v108_v8 = vld [vmem:[%s207_s0 + $0x8] sm:$0x1]  }
   0x5   :  { %s137_s30 = smov 72   ;;  %s138_s2 = smov 64   ;;  %v109_v9 = vld [vmem:[%s207_s0 + $0x7] sm:$0x1]   ;;  %v110_v10 = vld [vmem:[%s207_s0 + $0x6] sm:$0x1]  }
   0x6   :  { %13 = vrot.lane.b32.xlu0 %v102_v2, %s133_s16  ;;  %25 = vrot.lane.b32.xlu1 %v104_v3, %s134_s17  ;;  %s139_s7 = smov 56   ;;  %s140_s8 = smov 48   ;;  %v111_v11 = vld [vmem:[%s207_s0 + $0x5] sm:$0x1]   ;;  %v112_v12 = vld [vmem:[%s207_s0 + $0x4] sm:$0x1]  }
   0x7   :  { %s141_s13 = smov 40   ;;  %s142_s14 = smov 32   ;;  %v113_v13 = vld [vmem:[%s207_s0 + $0x3] sm:$0x1]   ;;  %v114_v14 = vld [vmem:[%s207_s0 + $0x2] sm:$0x1]  }
   0x8   :  { %s143_s19 = smov 24   ;;  %s144_s20 = smov 16   ;;  %v115_v15 = vld [vmem:[%s207_s0 + $0x1] sm:$0x1]   ;;  %vm27_vm4 = vcmask 851712   ;;  %vm33_vm5 = vcmask 786112  }
   0x9   :  { %s145_s0 = smov 8   ;;  %vm39_vm6 = vcmask 720512   ;;  %vm45_vm7 = vcmask 654912   ;;  %vm51_vm8 = vcmask 589312   ;;  %vm57_vm9 = vcmask 523712  }
   0xa   :  { %31 = vrot.lane.b32.xlu0 %v105_v4, %s135_s24  ;;  %37 = vrot.lane.b32.xlu1 %v106_v5, %s136_s25  ;;  %vm63_vm10 = vcmask 458112   ;;  %vm69_vm11 = vcmask 392512   ;;  %vm75_vm12 = vcmask 326912   ;;  %vm81_vm13 = vcmask 261312  }
   0xb   :  { %vm87_vm14 = vcmask 195712   ;;  %vm93_vm15 = vcmask 130112  }
   0xe   :  { %43 = vrot.lane.b32.xlu0 %v107_v7, %s137_s30  ;;  %49 = vrot.lane.b32.xlu1 %v108_v8, %s138_s2 }
  0x12   :  { %55 = vrot.lane.b32.xlu0 %v109_v9, %s139_s7  ;;  %61 = vrot.lane.b32.xlu1 %v110_v10, %s140_s8 }
  0x16   :  { %67 = vrot.lane.b32.xlu0 %v111_v11, %s141_s13  ;;  %73 = vrot.lane.b32.xlu1 %v112_v12, %s142_s14 }
  0x1a   :  { %79 = vrot.lane.b32.xlu0 %v113_v13, %s143_s19  ;;  %85 = vrot.lane.b32.xlu1 %v114_v14, %s144_s20 }
  0x1e   :  { %91 = vrot.lane.b32.xlu0 %v115_v15, %s145_s0 }
  0x74   :  { %v8_v16 = vpop.permute.xlu0 %7   ;;  %v20_v17 = vpop.permute.xlu1 %19  }
  0x75   :  { %10 = vst.msk [vmem:[#allocation0] sm:$0x1] %vm9_vm1, %v8_v16  }
  0x78   :  { %v14_v18 = vpop.permute.xlu0 %13   ;;  %v26_v19 = vpop.permute.xlu1 %25  }
  0x79   :  { %16 = vst.msk [vmem:[#allocation0] sm:$0x1] %vm15_vm2, %v14_v18  }
  0x7a   :  { %22 = vst.msk [vmem:[#allocation0] sm:$0x1] %vm21_vm3, %v20_v17  }
  0x7b   :  { %28 = vst.msk [vmem:[#allocation0] sm:$0x1] %vm27_vm4, %v26_v19  }
  0x7c   :  { %v32_v20 = vpop.permute.xlu0 %31   ;;  %v38_v21 = vpop.permute.xlu1 %37  }
  0x7d   :  { %34 = vst.msk [vmem:[#allocation0] sm:$0x1] %vm33_vm5, %v32_v20  }
  0x7e   :  { %40 = vst.msk [vmem:[#allocation0] sm:$0x1] %vm39_vm6, %v38_v21  }
  0x80   :  { %v44_v22 = vpop.permute.xlu0 %43   ;;  %v50_v23 = vpop.permute.xlu1 %49  }
  0x81   :  { %46 = vst.msk [vmem:[#allocation0] sm:$0x1] %vm45_vm7, %v44_v22  }
  0x82   :  { %52 = vst.msk [vmem:[#allocation0] sm:$0x1] %vm51_vm8, %v50_v23  }
  0x84   :  { %v56_v24 = vpop.permute.xlu0 %55   ;;  %v62_v25 = vpop.permute.xlu1 %61  }
  0x85   :  { %58 = vst.msk [vmem:[#allocation0] sm:$0x1] %vm57_vm9, %v56_v24  }
  0x86   :  { %64 = vst.msk [vmem:[#allocation0] sm:$0x1] %vm63_vm10, %v62_v25  }
  0x88   :  { %v68_v26 = vpop.permute.xlu0 %67   ;;  %v74_v27 = vpop.permute.xlu1 %73  }
  0x89   :  { %70 = vst.msk [vmem:[#allocation0] sm:$0x1] %vm69_vm11, %v68_v26  }
  0x8a   :  { %76 = vst.msk [vmem:[#allocation0] sm:$0x1] %vm75_vm12, %v74_v27  }
  0x8c   :  { %v80_v28 = vpop.permute.xlu0 %79   ;;  %v86_v29 = vpop.permute.xlu1 %85  }
  0x8d   :  { %82 = vst.msk [vmem:[#allocation0] sm:$0x1] %vm81_vm13, %v80_v28  }
  0x8e   :  { %88 = vst.msk [vmem:[#allocation0] sm:$0x1] %vm87_vm14, %v86_v29  }
  0x90   :  { %v92_v30 = vpop.permute.xlu0 %91  }
  0x91   :  { %94 = vst.msk [vmem:[#allocation0] sm:$0x1] %vm93_vm15, %v92_v30  }
  0x98   :  { %v98_v31 = vld [vmem:[#allocation0] sm:$0x1] }
  0x99   :  { %100 = vst [vmem:[%s208_s1] sm:$0x1] %v98_v31 }

// kernel: encoder2_forward.1
= control target key start
LH: loop header
LB: loop body
LE: loop exit
PB: predicated region body
PF: predicated region fallthrough
CT: control target
= control target key end

     0   :  { %vm191_vm0 = vcmask 793600   ;;  %vm240_vm1 = vcmask 1040384   ;;  %vm743_vm2 = vcmask 130048   ;;  %s1255_s6 = smov 64   ;;  %s1256_s7 = smov 32   ;;  %vm982_vm3 = vcmask 261120   ;;  %s2123_s1 = inlined_call_operand.vmem [shape: f32[225,400], index: 1, kind: input, shape index: {}]   ;;  %s2124_s0 = inlined_call_operand.vmem [shape: f32[4,32,225], index: 0, kind: input, shape index: {}]   ;;  %s2125_s3 = inlined_call_operand.vmem [shape: f32[400,128], index: 3, kind: input, shape index: {}]   ;;  %s2126_s2 = inlined_call_operand.vmem [shape: f32[1,400], index: 2, kind: input, shape index: {}]   ;;  %s2127_s4 = inlined_call_operand.vmem [shape: f32[1,128], index: 4, kind: input, shape index: {}]   ;;  %s2128_s5 = inlined_call_operand.vmem [shape: f32[8,128], index: 5, kind: output, shape index: {}]  }
   0x1   :  { %v55_v0 = vld [vmem:[%s2123_s1 + $0x8] sm:$0xff]  ;;  %v57_v2 = vld [vmem:[%s2123_s1 + $0x18] sm:$0xff]  ;;  %v54_v5 = vld [vmem:[%s2123_s1] sm:$0xff]  ;;  %vm984_vm4 = vcmask 523264   ;;  %vm986_vm5 = vcmask 785408  }
   0x2   :  { %v59_v1 = vld [vmem:[%s2123_s1 + $0x28] sm:$0xff]  ;;  %v61_v4 = vld [vmem:[%s2123_s1 + $0x38] sm:$0xff]  ;;  %v58_v6 = vld [vmem:[%s2123_s1 + $0x20] sm:$0xff] }
   0x3   :  { %v1078_v3 = vpack.c.bf16 %v59_v1, %v55_v0  ;;  %v1134_v7 = vpack.c.bf16 %v61_v4, %v57_v2  ;;  %v1080_v8 = vpack.c.bf16 %v58_v6, %v54_v5  ;;  %v56_v9 = vld [vmem:[%s2123_s1 + $0x10] sm:$0xff]  ;;  %v63_v11 = vld [vmem:[%s2123_s1 + $0x48] sm:$0xff]  ;;  %v65_v14 = vld [vmem:[%s2123_s1 + $0x58] sm:$0xff] }
   0x4   :  { %v60_v10 = vld [vmem:[%s2123_s1 + $0x30] sm:$0xff]  ;;  %v67_v13 = vld [vmem:[%s2123_s1 + $0x68] sm:$0xff]  ;;  %v69_v15 = vld [vmem:[%s2123_s1 + $0x78] sm:$0xff] }
   0x5   :  { %1079 = vmatprep.subr.bf16.mxu0 %v1078_v3  ;;  %v1136_v12 = vpack.c.bf16 %v60_v10, %v56_v9  ;;  %1135 = vmatprep.subr.bf16.mxu1 %v1134_v7  ;;  %v1082_v16 = vpack.c.bf16 %v67_v13, %v63_v11  ;;  %v1138_v17 = vpack.c.bf16 %v69_v15, %v65_v14  ;;  %v62_v18 = vld [vmem:[%s2123_s1 + $0x40] sm:$0xff]  ;;  %v64_v20 = vld [vmem:[%s2123_s1 + $0x50] sm:$0xff]  ;;  %v71_v23 = vld [vmem:[%s2123_s1 + $0x88] sm:$0xff] }
   0x6   :  { %1081 = vmatpush1.bf16.msra.mxu0 %v1080_v8  ;;  %v66_v19 = vld [vmem:[%s2123_s1 + $0x60] sm:$0xff]  ;;  %v68_v22 = vld [vmem:[%s2123_s1 + $0x70] sm:$0xff]  ;;  %v75_v24 = vld [vmem:[%s2123_s1 + $0xa8] sm:$0xff] }
   0x7   :  { %1137 = vmatpush1.bf16.msra.mxu1 %v1136_v12  ;;  %v1084_v21 = vpack.c.bf16 %v66_v19, %v62_v18  ;;  %1083 = vmatprep.subr.bf16.mxu0 %v1082_v16  ;;  %v1140_v25 = vpack.c.bf16 %v68_v22, %v64_v20  ;;  %v1086_v26 = vpack.c.bf16 %v75_v24, %v71_v23  ;;  %v73_v27 = vld [vmem:[%s2123_s1 + $0x98] sm:$0xff]  ;;  %v70_v29 = vld [vmem:[%s2123_s1 + $0x80] sm:$0xff]  ;;  %v72_v32 = vld [vmem:[%s2123_s1 + $0x90] sm:$0xff] }
   0x8   :  { %1139 = vmatprep.subr.bf16.mxu1 %v1138_v17  ;;  %v77_v28 = vld [vmem:[%s2123_s1 + $0xb8] sm:$0xff]  ;;  %v74_v31 = vld [vmem:[%s2123_s1 + $0xa0] sm:$0xff]  ;;  %v76_v33 = vld [vmem:[%s2123_s1 + $0xb0] sm:$0xff] }
   0x9   :  { %v1142_v30 = vpack.c.bf16 %v77_v28, %v73_v27  ;;  %v1088_v34 = vpack.c.bf16 %v74_v31, %v70_v29  ;;  %v79_v35 = vld [vmem:[%s2123_s1 + $0xc8] sm:$0xff]  ;;  %v81_v37 = vld [vmem:[%s2123_s1 + $0xd8] sm:$0xff]  ;;  %v1144_v38 = vpack.c.bf16 %v76_v33, %v72_v32  ;;  %v78_v41 = vld [vmem:[%s2123_s1 + $0xc0] sm:$0xff] }
   0xa   :  { %1085 = vmatpush1.bf16.msra.mxu0 %v1084_v21  ;;  %v83_v36 = vld [vmem:[%s2123_s1 + $0xe8] sm:$0xff]  ;;  %v85_v40 = vld [vmem:[%s2123_s1 + $0xf8] sm:$0xff]  ;;  %v82_v42 = vld [vmem:[%s2123_s1 + $0xe0] sm:$0xff] }
   0xb   :  { %1141 = vmatpush1.bf16.msra.mxu1 %v1140_v25  ;;  %1087 = vmatprep.subr.bf16.mxu0 %v1086_v26  ;;  %v1090_v39 = vpack.c.bf16 %v83_v36, %v79_v35  ;;  %v1146_v43 = vpack.c.bf16 %v85_v40, %v81_v37  ;;  %v80_v44 = vld [vmem:[%s2123_s1 + $0xd0] sm:$0xff]  ;;  %v87_v46 = vld [vmem:[%s2123_s1 + $0x108] sm:$0xff]  ;;  %v89_v48 = vld [vmem:[%s2123_s1 + $0x118] sm:$0xff]  ;;  %v1092_v50 = vpack.c.bf16 %v82_v42, %v78_v41 }
   0xc   :  { %1143 = vmatprep.subr.bf16.mxu1 %v1142_v30  ;;  %v84_v45 = vld [vmem:[%s2123_s1 + $0xf0] sm:$0xff]  ;;  %v91_v47 = vld [vmem:[%s2123_s1 + $0x128] sm:$0xff]  ;;  %v93_v49 = vld [vmem:[%s2123_s1 + $0x138] sm:$0xff] }
   0xd   :  { %v1148_v51 = vpack.c.bf16 %v84_v45, %v80_v44  ;;  %v1094_v52 = vpack.c.bf16 %v91_v47, %v87_v46  ;;  %v86_v53 = vld [vmem:[%s2123_s1 + $0x100] sm:$0xff]  ;;  %v88_v55 = vld [vmem:[%s2123_s1 + $0x110] sm:$0xff]  ;;  %v1150_v56 = vpack.c.bf16 %v93_v49, %v89_v48  ;;  %v95_v58 = vld [vmem:[%s2123_s1 + $0x148] sm:$0xff] }
   0xe   :  { %1089 = vmatpush1.bf16.msra.mxu0 %v1088_v34  ;;  %v90_v54 = vld [vmem:[%s2123_s1 + $0x120] sm:$0xff]  ;;  %v92_v57 = vld [vmem:[%s2123_s1 + $0x130] sm:$0xff]  ;;  %v99_v59 = vld [vmem:[%s2123_s1 + $0x168] sm:$0xff] }
   0xf   :  { %1145 = vmatpush1.bf16.msra.mxu1 %v1144_v38  ;;  %1091 = vmatprep.subr.bf16.mxu0 %v1090_v39  ;;  %v97_v60 = vld [vmem:[%s2123_s1 + $0x158] sm:$0xff]  ;;  %v1096_v62 = vpack.c.bf16 %v90_v54, %v86_v53  ;;  %v1152_v63 = vpack.c.bf16 %v92_v57, %v88_v55  ;;  %v1098_v0 = vpack.c.bf16 %v99_v59, %v95_v58  ;;  %v94_v1 = vld [vmem:[%s2123_s1 + $0x140] sm:$0xff]  ;;  %v96_v3 = vld [vmem:[%s2123_s1 + $0x150] sm:$0xff] }
  0x10   :  { %1147 = vmatprep.subr.bf16.mxu1 %v1146_v43  ;;  %v101_v61 = vld [vmem:[%s2123_s1 + $0x178] sm:$0xff]  ;;  %v98_v2 = vld [vmem:[%s2123_s1 + $0x160] sm:$0xff]  ;;  %v100_v5 = vld [vmem:[%s2123_s1 + $0x170] sm:$0xff] }
  0x11   :  { %v1154_v4 = vpack.c.bf16 %v101_v61, %v97_v60  ;;  %v103_v6 = vld [vmem:[%s2123_s1 + $0x188] sm:$0xff]  ;;  %v105_v8 = vld [vmem:[%s2123_s1 + $0x198] sm:$0xff]  ;;  %v1100_v10 = vpack.c.bf16 %v98_v2, %v94_v1  ;;  %v1156_v11 = vpack.c.bf16 %v100_v5, %v96_v3  ;;  %v102_v13 = vld [vmem:[%s2123_s1 + $0x180] sm:$0xff] }
  0x12   :  { %1093 = vmatpush1.bf16.msra.mxu0 %v1092_v50  ;;  %v107_v7 = vld [vmem:[%s2123_s1 + $0x1a8] sm:$0xff]  ;;  %v109_v9 = vld [vmem:[%s2123_s1 + $0x1b8] sm:$0xff]  ;;  %v106_v14 = vld [vmem:[%s2123_s1 + $0x1a0] sm:$0xff] }
  0x13   :  { %1149 = vmatpush1.bf16.msra.mxu1 %v1148_v51  ;;  %1095 = vmatprep.subr.bf16.mxu0 %v1094_v52  ;;  %v1102_v12 = vpack.c.bf16 %v107_v7, %v103_v6  ;;  %v104_v15 = vld [vmem:[%s2123_s1 + $0x190] sm:$0xff]  ;;  %v1158_v16 = vpack.c.bf16 %v109_v9, %v105_v8  ;;  %v111_v18 = vld [vmem:[%s2123_s1 + $0x1c8] sm:$0xff]  ;;  %v113_v20 = vld [vmem:[%s2123_s1 + $0x1d8] sm:$0xff]  ;;  %v1104_v22 = vpack.c.bf16 %v106_v14, %v102_v13 }
  0x14   :  { %1151 = vmatprep.subr.bf16.mxu1 %v1150_v56  ;;  %v108_v17 = vld [vmem:[%s2123_s1 + $0x1b0] sm:$0xff]  ;;  %v115_v19 = vld [vmem:[%s2123_s1 + $0x1e8] sm:$0xff]  ;;  %v117_v21 = vld [vmem:[%s2123_s1 + $0x1f8] sm:$0xff] }
  0x15   :  { %v1160_v23 = vpack.c.bf16 %v108_v17, %v104_v15  ;;  %v1106_v24 = vpack.c.bf16 %v115_v19, %v111_v18  ;;  %v110_v25 = vld [vmem:[%s2123_s1 + $0x1c0] sm:$0xff]  ;;  %v112_v27 = vld [vmem:[%s2123_s1 + $0x1d0] sm:$0xff]  ;;  %v1162_v28 = vpack.c.bf16 %v117_v21, %v113_v20  ;;  %v119_v30 = vld [vmem:[%s2123_s1 + $0x208] sm:$0xff] }
  0x16   :  { %1097 = vmatpush1.bf16.msra.mxu0 %v1096_v62  ;;  %v114_v26 = vld [vmem:[%s2123_s1 + $0x1e0] sm:$0xff]  ;;  %v116_v29 = vld [vmem:[%s2123_s1 + $0x1f0] sm:$0xff]  ;;  %v123_v31 = vld [vmem:[%s2123_s1 + $0x228] sm:$0xff] }
  0x17   :  { %1153 = vmatpush1.bf16.msra.mxu1 %v1152_v63  ;;  %1099 = vmatprep.subr.bf16.mxu0 %v1098_v0  ;;  %v121_v32 = vld [vmem:[%s2123_s1 + $0x218] sm:$0xff]  ;;  %v1108_v34 = vpack.c.bf16 %v114_v26, %v110_v25  ;;  %v1164_v35 = vpack.c.bf16 %v116_v29, %v112_v27  ;;  %v1110_v36 = vpack.c.bf16 %v123_v31, %v119_v30  ;;  %v118_v37 = vld [vmem:[%s2123_s1 + $0x200] sm:$0xff]  ;;  %v120_v39 = vld [vmem:[%s2123_s1 + $0x210] sm:$0xff] }
  0x18   :  { %1155 = vmatprep.subr.bf16.mxu1 %v1154_v4  ;;  %v125_v33 = vld [vmem:[%s2123_s1 + $0x238] sm:$0xff]  ;;  %v122_v38 = vld [vmem:[%s2123_s1 + $0x220] sm:$0xff]  ;;  %v124_v41 = vld [vmem:[%s2123_s1 + $0x230] sm:$0xff] }
  0x19   :  { %v1166_v40 = vpack.c.bf16 %v125_v33, %v121_v32  ;;  %v127_v42 = vld [vmem:[%s2123_s1 + $0x248] sm:$0xff]  ;;  %v129_v44 = vld [vmem:[%s2123_s1 + $0x258] sm:$0xff]  ;;  %v1112_v46 = vpack.c.bf16 %v122_v38, %v118_v37  ;;  %v1168_v47 = vpack.c.bf16 %v124_v41, %v120_v39  ;;  %v126_v49 = vld [vmem:[%s2123_s1 + $0x240] sm:$0xff] }
  0x1a   :  { %1101 = vmatpush1.bf16.msra.mxu0 %v1100_v10  ;;  %v131_v43 = vld [vmem:[%s2123_s1 + $0x268] sm:$0xff]  ;;  %v133_v45 = vld [vmem:[%s2123_s1 + $0x278] sm:$0xff]  ;;  %v130_v50 = vld [vmem:[%s2123_s1 + $0x260] sm:$0xff] }
  0x1b   :  { %1157 = vmatpush1.bf16.msra.mxu1 %v1156_v11  ;;  %1103 = vmatprep.subr.bf16.mxu0 %v1102_v12  ;;  %v1114_v48 = vpack.c.bf16 %v131_v43, %v127_v42  ;;  %v128_v51 = vld [vmem:[%s2123_s1 + $0x250] sm:$0xff]  ;;  %v1170_v52 = vpack.c.bf16 %v133_v45, %v129_v44  ;;  %v135_v54 = vld [vmem:[%s2123_s1 + $0x288] sm:$0xff]  ;;  %v137_v56 = vld [vmem:[%s2123_s1 + $0x298] sm:$0xff]  ;;  %v1116_v58 = vpack.c.bf16 %v130_v50, %v126_v49 }
  0x1c   :  { %1159 = vmatprep.subr.bf16.mxu1 %v1158_v16  ;;  %v132_v53 = vld [vmem:[%s2123_s1 + $0x270] sm:$0xff]  ;;  %v139_v55 = vld [vmem:[%s2123_s1 + $0x2a8] sm:$0xff]  ;;  %v141_v57 = vld [vmem:[%s2123_s1 + $0x2b8] sm:$0xff] }
  0x1d   :  { %v134_v59 = vld [vmem:[%s2123_s1 + $0x280] sm:$0xff]  ;;  %v1172_v60 = vpack.c.bf16 %v132_v53, %v128_v51  ;;  %v1118_v61 = vpack.c.bf16 %v139_v55, %v135_v54  ;;  %v136_v63 = vld [vmem:[%s2123_s1 + $0x290] sm:$0xff]  ;;  %v1174_v1 = vpack.c.bf16 %v141_v57, %v137_v56  ;;  %v143_v2 = vld [vmem:[%s2123_s1 + $0x2c8] sm:$0xff]  ;;  %v1253_v55 = vmov 0.0|0.0  }
  0x1e   :  { %1105 = vmatpush1.bf16.msra.mxu0 %v1104_v22  ;;  %v138_v62 = vld [vmem:[%s2123_s1 + $0x2a0] sm:$0xff]  ;;  %v140_v0 = vld [vmem:[%s2123_s1 + $0x2b0] sm:$0xff]  ;;  %v147_v3 = vld [vmem:[%s2123_s1 + $0x2e8] sm:$0xff] }
  0x1f   :  { %1161 = vmatpush1.bf16.msra.mxu1 %v1160_v23  ;;  %1107 = vmatprep.subr.bf16.mxu0 %v1106_v24  ;;  %v23_v4 = vld [vmem:[%s2124_s0 + $0x8] sm:$0xff]  ;;  %v145_v5 = vld [vmem:[%s2123_s1 + $0x2d8] sm:$0xff]  ;;  %v1120_v7 = vpack.c.bf16 %v138_v62, %v134_v59  ;;  %v1176_v8 = vpack.c.bf16 %v140_v0, %v136_v63  ;;  %v1122_v9 = vpack.c.bf16 %v147_v3, %v143_v2  ;;  %v142_v10 = vld [vmem:[%s2123_s1 + $0x2c0] sm:$0xff] }
  0x20   :  { %1163 = vmatprep.subr.bf16.mxu1 %v1162_v28  ;;  %v149_v6 = vld [vmem:[%s2123_s1 + $0x2f8] sm:$0xff]  ;;  %995 = vmatprep.mubr.msk.f32.mxu0 %vm191_vm0, %v23_v4  ;;  %v146_v11 = vld [vmem:[%s2123_s1 + $0x2e0] sm:$0xff]  ;;  %v144_v12 = vld [vmem:[%s2123_s1 + $0x2d0] sm:$0xff] }
  0x21   :  { %1013 = vmatprep.mubr.msk.f32.mxu1 %vm191_vm0, %v23_v4  ;;  %v1178_v13 = vpack.c.bf16 %v149_v6, %v145_v5  ;;  %v148_v14 = vld [vmem:[%s2123_s1 + $0x2f0] sm:$0xff]  ;;  %v151_v15 = vld [vmem:[%s2123_s1 + $0x308] sm:$0xff]  ;;  %v153_v17 = vld [vmem:[%s2123_s1 + $0x318] sm:$0xff]  ;;  %v1124_v19 = vpack.c.bf16 %v146_v11, %v142_v10 }
  0x22   :  { %1109 = vmatpush1.bf16.msra.mxu0 %v1108_v34  ;;  %v155_v16 = vld [vmem:[%s2123_s1 + $0x328] sm:$0xff]  ;;  %v157_v18 = vld [vmem:[%s2123_s1 + $0x338] sm:$0xff]  ;;  %v1180_v20 = vpack.c.bf16 %v148_v14, %v144_v12  ;;  %v150_v22 = vld [vmem:[%s2123_s1 + $0x300] sm:$0xff] }
  0x23   :  { %1165 = vmatpush1.bf16.msra.mxu1 %v1164_v35  ;;  %1111 = vmatprep.subr.bf16.mxu0 %v1110_v36  ;;  %v1126_v21 = vpack.c.bf16 %v155_v16, %v151_v15  ;;  %v154_v23 = vld [vmem:[%s2123_s1 + $0x320] sm:$0xff]  ;;  %v152_v24 = vld [vmem:[%s2123_s1 + $0x310] sm:$0xff]  ;;  %v1182_v25 = vpack.c.bf16 %v157_v18, %v153_v17  ;;  %v159_v27 = vld [vmem:[%s2123_s1 + $0x348] sm:$0xff] }
  0x24   :  { %1167 = vmatprep.subr.bf16.mxu1 %v1166_v40  ;;  %v156_v26 = vld [vmem:[%s2123_s1 + $0x330] sm:$0xff]  ;;  %v163_v28 = vld [vmem:[%s2123_s1 + $0x368] sm:$0xff]  ;;  %v161_v29 = vld [vmem:[%s2123_s1 + $0x358] sm:$0xff]  ;;  %v1128_v31 = vpack.c.bf16 %v154_v23, %v150_v22 }
  0x25   :  { %v165_v30 = vld [vmem:[%s2123_s1 + $0x378] sm:$0xff]  ;;  %v1184_v32 = vpack.c.bf16 %v156_v26, %v152_v24  ;;  %v1130_v33 = vpack.c.bf16 %v163_v28, %v159_v27  ;;  %v158_v34 = vld [vmem:[%s2123_s1 + $0x340] sm:$0xff]  ;;  %v160_v37 = vld [vmem:[%s2123_s1 + $0x350] sm:$0xff] }
  0x26   :  { %1113 = vmatpush1.bf16.msra.mxu0 %v1112_v46  ;;  %v162_v35 = vld [vmem:[%s2123_s1 + $0x360] sm:$0xff]  ;;  %v1186_v36 = vpack.c.bf16 %v165_v30, %v161_v29  ;;  %v164_v38 = vld [vmem:[%s2123_s1 + $0x370] sm:$0xff]  ;;  %v167_v41 = vld [vmem:[%s2123_s1 + $0x388] sm:$0x1] }
  0x27   :  { %1169 = vmatpush1.bf16.msra.mxu1 %v1168_v47  ;;  %1115 = vmatprep.subr.bf16.mxu0 %v1114_v48  ;;  %v1132_v39 = vpack.c.bf16 %v162_v35, %v158_v34  ;;  %v1188_v40 = vpack.c.bf16 %v164_v38, %v160_v37  ;;  %v169_v42 = vld [vmem:[%s2123_s1 + $0x398] sm:$0x1]  ;;  %v703_v43 = vld [vmem:[%s2125_s3 + $0x80] sm:$0xff]  ;;  %v704_v44 = vld [vmem:[%s2125_s3 + $0x88] sm:$0xff] }
  0x28   :  { %1171 = vmatprep.subr.bf16.mxu1 %v1170_v52  ;;  %v166_v45 = vld [vmem:[%s2123_s1 + $0x380] sm:$0x1]  ;;  %v688_v47 = vld [vmem:[%s2125_s3 + $0x8] sm:$0xff]  ;;  %v168_v48 = vld [vmem:[%s2123_s1 + $0x390] sm:$0x1]  ;;  %v1190_v51 = vpack.c.bf16 %v704_v44, %v703_v43 }
  0x29   :  { %v687_v46 = vld [vmem:[%s2125_s3] sm:$0xff]  ;;  %v25_v50 = vld [vmem:[%s2124_s0 + $0x18] sm:$0xff]  ;;  %v24_v53 = vld [vmem:[%s2124_s0 + $0x10] sm:$0xff] }
  0x2a   :  { %1117 = vmatpush1.bf16.msra.mxu0 %v1116_v58  ;;  %v22_v49 = vld [vmem:[%s2124_s0] sm:$0xff]  ;;  %v1192_v52 = vpack.c.bf16 %v688_v47, %v687_v46  ;;  %v27_v54 = vld [vmem:[%s2124_s0 + $0x28] sm:$0xff]  ;;  %v29_v57 = vld [vmem:[%s2124_s0 + $0x38] sm:$0xff] }
  0x2b   :  { %1173 = vmatpush1.bf16.msra.mxu1 %v1172_v60  ;;  %1119 = vmatprep.subr.bf16.mxu0 %v1118_v61  ;;  %v26_v56 = vld [vmem:[%s2124_s0 + $0x20] sm:$0xff]  ;;  %v28_v58 = vld [vmem:[%s2124_s0 + $0x30] sm:$0xff]  ;;  %v31_v59 = vld [vmem:[%s2124_s0 + $0x48] sm:$0xff] }
  0x2c   :  { %1175 = vmatprep.subr.bf16.mxu1 %v1174_v1  ;;  %v30_v60 = vld [vmem:[%s2124_s0 + $0x40] sm:$0xff]  ;;  %v33_v61 = vld [vmem:[%s2124_s0 + $0x58] sm:$0xff]  ;;  %v32_v62 = vld [vmem:[%s2124_s0 + $0x50] sm:$0xff] }
  0x2d   :  { %v35_v63 = vld [vmem:[%s2124_s0 + $0x68] sm:$0xff]  ;;  %v34_v0 = vld [vmem:[%s2124_s0 + $0x60] sm:$0xff]  ;;  %v37_v1 = vld [vmem:[%s2124_s0 + $0x78] sm:$0xff] }
  0x2e   :  { %1121 = vmatpush1.bf16.msra.mxu0 %v1120_v7  ;;  %v36_v2 = vld [vmem:[%s2124_s0 + $0x70] sm:$0xff]  ;;  %v39_v3 = vld [vmem:[%s2124_s0 + $0x88] sm:$0xff]  ;;  %v38_v4 = vld [vmem:[%s2124_s0 + $0x80] sm:$0xff] }
  0x2f   :  { %1177 = vmatpush1.bf16.msra.mxu1 %v1176_v8  ;;  %1123 = vmatprep.subr.bf16.mxu0 %v1122_v9  ;;  %v41_v5 = vld [vmem:[%s2124_s0 + $0x98] sm:$0xff]  ;;  %v40_v6 = vld [vmem:[%s2124_s0 + $0x90] sm:$0xff]  ;;  %v43_v7 = vld [vmem:[%s2124_s0 + $0xa8] sm:$0xff] }
  0x30   :  { %1179 = vmatprep.subr.bf16.mxu1 %v1178_v13  ;;  %v42_v8 = vld [vmem:[%s2124_s0 + $0xa0] sm:$0xff]  ;;  %v45_v9 = vld [vmem:[%s2124_s0 + $0xb8] sm:$0xff]  ;;  %v44_v10 = vld [vmem:[%s2124_s0 + $0xb0] sm:$0xff] }
  0x31   :  { %v47_v11 = vld [vmem:[%s2124_s0 + $0xc8] sm:$0xff]  ;;  %v46_v12 = vld [vmem:[%s2124_s0 + $0xc0] sm:$0xff]  ;;  %v49_v13 = vld [vmem:[%s2124_s0 + $0xd8] sm:$0xff] }
  0x32   :  { %1125 = vmatpush1.bf16.msra.mxu0 %v1124_v19  ;;  %v48_v14 = vld [vmem:[%s2124_s0 + $0xd0] sm:$0xff]  ;;  %v51_v15 = vld [vmem:[%s2124_s0 + $0xe8] sm:$0xff]  ;;  %v50_v16 = vld [vmem:[%s2124_s0 + $0xe0] sm:$0xff] }
  0x33   :  { %1181 = vmatpush1.bf16.msra.mxu1 %v1180_v20  ;;  %1127 = vmatprep.subr.bf16.mxu0 %v1126_v21  ;;  %v53_v17 = vld [vmem:[%s2124_s0 + $0xf8] sm:$0xff]  ;;  %v52_v18 = vld [vmem:[%s2124_s0 + $0xf0] sm:$0xff]  ;;  %v719_v19 = vld [vmem:[%s2125_s3 + $0x100] sm:$0xff] }
  0x34   :  { %1183 = vmatprep.subr.bf16.mxu1 %v1182_v25  ;;  %v720_v20 = vld [vmem:[%s2125_s3 + $0x108] sm:$0xff]  ;;  %v705_v22 = vld [vmem:[%s2125_s3 + $0x90] sm:$0xff]  ;;  %v706_v23 = vld [vmem:[%s2125_s3 + $0x98] sm:$0xff] }
  0x35   :  { %v1223_v21 = vpack.c.bf16 %v720_v20, %v719_v19  ;;  %v689_v24 = vld [vmem:[%s2125_s3 + $0x10] sm:$0xff]  ;;  %v1194_v25 = vpack.c.bf16 %v706_v23, %v705_v22  ;;  %v690_v26 = vld [vmem:[%s2125_s3 + $0x18] sm:$0xff]  ;;  %v692_v35 = vld [vmem:[%s2125_s3 + $0x28] sm:$0xff] }
  0x36   :  { %1129 = vmatpush1.bf16.msra.mxu0 %v1128_v31  ;;  %v1196_v27 = vpack.c.bf16 %v690_v26, %v689_v24  ;;  %v721_v28 = vld [vmem:[%s2125_s3 + $0x110] sm:$0xff]  ;;  %v722_v29 = vld [vmem:[%s2125_s3 + $0x118] sm:$0xff]  ;;  %v707_v31 = vld [vmem:[%s2125_s3 + $0xa0] sm:$0xff] }
  0x37   :  { %1185 = vmatpush1.bf16.msra.mxu1 %v1184_v32  ;;  %1131 = vmatprep.subr.bf16.mxu0 %v1130_v33  ;;  %v1226_v30 = vpack.c.bf16 %v722_v29, %v721_v28  ;;  %v708_v32 = vld [vmem:[%s2125_s3 + $0xa8] sm:$0xff]  ;;  %v691_v33 = vld [vmem:[%s2125_s3 + $0x20] sm:$0xff]  ;;  %v694_v44 = vld [vmem:[%s2125_s3 + $0x38] sm:$0xff] }
  0x38   :  { %1187 = vmatprep.subr.bf16.mxu1 %v1186_v36  ;;  %v1198_v34 = vpack.c.bf16 %v708_v32, %v707_v31  ;;  %v1200_v36 = vpack.c.bf16 %v692_v35, %v691_v33  ;;  %v723_v37 = vld [vmem:[%s2125_s3 + $0x120] sm:$0xff]  ;;  %v724_v38 = vld [vmem:[%s2125_s3 + $0x128] sm:$0xff]  ;;  %v725_v46 = vld [vmem:[%s2125_s3 + $0x130] sm:$0xff] }
  0x39   :  { %v726_v47 = vld [vmem:[%s2125_s3 + $0x138] sm:$0xff]  ;;  %v701_v19 = vld [vmem:[%s2125_s3 + $0x70] sm:$0xff]  ;;  %v736_v23 = vld [vmem:[%s2125_s3 + $0x188] sm:$0xff] }
  0x3a   :  { %1133 = vmatpush1.bf16.msra.mxu0 %v1132_v39  ;;  %v1229_v39 = vpack.c.bf16 %v724_v38, %v723_v37  ;;  %v702_v20 = vld [vmem:[%s2125_s3 + $0x78] sm:$0xff]  ;;  %v20_v33 = vld [vmem:[%s2126_s2] sm:$0xf] }
  0x3b   :  { %1189 = vmatpush1.bf16.msra.mxu1 %v1188_v40  ;;  %993 = vmatprep.subr.msk.mxu0 %vm240_vm1, %v167_v41  ;;  %v709_v40 = vld [vmem:[%s2125_s3 + $0xb0] sm:$0xff]  ;;  %v710_v41 = vld [vmem:[%s2125_s3 + $0xb8] sm:$0xff]  ;;  %v1220_v22 = vpack.c.bf16 %v702_v20, %v701_v19 }
  0x3c   :  { %1011 = vmatprep.subr.msk.mxu1 %vm240_vm1, %v169_v42  ;;  %v693_v42 = vld [vmem:[%s2125_s3 + $0x30] sm:$0xff]  ;;  %v1202_v43 = vpack.c.bf16 %v710_v41, %v709_v40 }
  0x3e   :  { %994 = vmatpush1.msk.msra.mxu0 %vm240_vm1, %v166_v45  ;;  %v1204_v45 = vpack.c.bf16 %v694_v44, %v693_v42 }
  0x3f   :  { %1012 = vmatpush1.msk.msra.mxu1 %vm240_vm1, %v168_v48  ;;  %318 = vmatmul.mubr.f32.vlgmr.msra.gmra.mrb[0].mxu0 %v22_v49  ;;  %v1232_v48 = vpack.c.bf16 %v726_v47, %v725_v46 }
  0x40   :  { %479 = vmatmul.mubr.f32.vlgmr.msra.gmra.mrb[0].mxu1 %v22_v49  ;;  %996 = vmatprep.mubr.msk.f32.mxu0 %vm191_vm0, %v25_v50  ;;  %v711_v49 = vld [vmem:[%s2125_s3 + $0xc0] sm:$0xff] }
  0x41   :  { %1014 = vmatprep.mubr.msk.f32.mxu1 %vm191_vm0, %v25_v50  ;;  %1191 = vmatprep.subr.bf16.mxu0 %v1190_v51  ;;  %v712_v50 = vld [vmem:[%s2125_s3 + $0xc8] sm:$0xff]  ;;  %v695_v51 = vld [vmem:[%s2125_s3 + $0x40] sm:$0xff] }
  0x42   :  { %1193 = vmatpush3.bf16.msra.mxu0 %v1192_v52  ;;  %1222 = vmatprep.subr.bf16.mxu1 %v1253_v55  ;;  %v1206_v52 = vpack.c.bf16 %v712_v50, %v711_v49 }
  0x43   :  { %324 = vmatmul.mubr.f32.gmra.mrb[2].mxu0 %v24_v53  ;;  %1224 = vmatpush1.bf16.msra.mxu1 %v1223_v21  ;;  %v735_v21 = vld [vmem:[%s2125_s3 + $0x180] sm:$0xff] }
  0x44   :  { %485 = vmatmul.mubr.f32.gmra.mrb[2].mxu1 %v24_v53  ;;  %997 = vmatprep.mubr.msk.f32.mxu0 %vm191_vm0, %v27_v54  ;;  %v696_v53 = vld [vmem:[%s2125_s3 + $0x48] sm:$0xff]  ;;  %v1247_v24 = vpack.c.bf16 %v736_v23, %v735_v21 }
  0x45   :  { %1015 = vmatprep.mubr.msk.f32.mxu1 %vm191_vm0, %v27_v54  ;;  %1195 = vmatprep.subr.bf16.mxu0 %v1194_v25  ;;  %v1208_v54 = vpack.c.bf16 %v696_v53, %v695_v51  ;;  %v171_v25 = vlaneseq }
  0x46   :  { %1225 = vmatprep.subr.bf16.mxu1 %v1253_v55  ;;  %1197 = vmatpush3.bf16.msra.mxu0 %v1196_v27 }
  0x47   :  { %330 = vmatmul.mubr.f32.gmra.mrb[4].mxu0 %v26_v56  ;;  %1227 = vmatpush1.bf16.msra.mxu1 %v1226_v30  ;;  %v172_v26 = vshrl.u32 %v171_v25, 7 }
  0x48   :  { %491 = vmatmul.mubr.f32.gmra.mrb[4].mxu1 %v26_v56  ;;  %998 = vmatprep.mubr.msk.f32.mxu0 %vm191_vm0, %v29_v57  ;;  %v727_v56 = vld [vmem:[%s2125_s3 + $0x140] sm:$0xff] }
  0x49   :  { %1016 = vmatprep.mubr.msk.f32.mxu1 %vm191_vm0, %v29_v57  ;;  %1199 = vmatprep.subr.bf16.mxu0 %v1198_v34  ;;  %v728_v57 = vld [vmem:[%s2125_s3 + $0x148] sm:$0xff]  ;;  %v177_v31 = vsub.s32 1, %v172_v26  ;;  %v181_v34 = vsub.s32 2, %v172_v26 }
  0x4a   :  { %1228 = vmatprep.subr.bf16.mxu1 %v1253_v55  ;;  %1201 = vmatpush3.bf16.msra.mxu0 %v1200_v36  ;;  %v185_v36 = vsub.s32 3, %v172_v26 }
  0x4b   :  { %336 = vmatmul.mubr.f32.gmra.mrb[6].mxu0 %v28_v58  ;;  %1230 = vmatpush1.bf16.msra.mxu1 %v1229_v39  ;;  %v1931_v40 = vrot.slane %v20_v33, %v177_v31  ;;  %v1933_v42 = vrot.slane %v20_v33, %v181_v34 }
  0x4c   :  { %497 = vmatmul.mubr.f32.gmra.mrb[6].mxu1 %v28_v58  ;;  %999 = vmatprep.mubr.msk.f32.mxu0 %vm191_vm0, %v31_v59  ;;  %v1235_v58 = vpack.c.bf16 %v728_v57, %v727_v56 }
  0x4d   :  { %1017 = vmatprep.mubr.msk.f32.mxu1 %vm191_vm0, %v31_v59  ;;  %1231 = vmatprep.subr.bf16.mxu1 %v1253_v55  ;;  %v713_v59 = vld [vmem:[%s2125_s3 + $0xd0] sm:$0xff] }
  0x4e   :  { %1203 = vmatprep.subr.bf16.mxu0 %v1202_v43  ;;  %v1935_v43 = vrot.slane %v20_v33, %v185_v36 }
  0x4f   :  { %342 = vmatmul.mubr.f32.gmra.mrb[8].mxu0 %v30_v60  ;;  %1233 = vmatpush1.bf16.msra.mxu1 %v1232_v48 }
  0x50   :  { %503 = vmatmul.mubr.f32.gmra.mrb[8].mxu1 %v30_v60  ;;  %1000 = vmatprep.mubr.msk.f32.mxu0 %vm191_vm0, %v33_v61  ;;  %v714_v60 = vld [vmem:[%s2125_s3 + $0xd8] sm:$0xff] }
  0x51   :  { %1018 = vmatprep.mubr.msk.f32.mxu1 %vm191_vm0, %v33_v61  ;;  %1205 = vmatpush3.bf16.msra.mxu0 %v1204_v45  ;;  %v697_v61 = vld [vmem:[%s2125_s3 + $0x50] sm:$0xff] }
  0x52   :  { %1234 = vmatprep.subr.bf16.mxu1 %v1253_v55  ;;  %1207 = vmatprep.subr.bf16.mxu0 %v1206_v52 }
  0x53   :  { %348 = vmatmul.mubr.f32.gmra.mrb[10].mxu0 %v32_v62  ;;  %1236 = vmatpush1.bf16.msra.mxu1 %v1235_v58 }
  0x54   :  { %509 = vmatmul.mubr.f32.gmra.mrb[10].mxu1 %v32_v62  ;;  %1001 = vmatprep.mubr.msk.f32.mxu0 %vm191_vm0, %v35_v63  ;;  %v1210_v62 = vpack.c.bf16 %v714_v60, %v713_v59 }
  0x55   :  { %1019 = vmatprep.mubr.msk.f32.mxu1 %vm191_vm0, %v35_v63  ;;  %1209 = vmatpush3.bf16.msra.mxu0 %v1208_v54  ;;  %v698_v63 = vld [vmem:[%s2125_s3 + $0x58] sm:$0xff] }
  0x56   :  { %1211 = vmatprep.subr.bf16.mxu0 %v1210_v62  ;;  %1237 = vmatprep.subr.bf16.mxu1 %v1253_v55 }
  0x57   :  { %354 = vmatmul.mubr.f32.gmra.mrb[12].mxu0 %v34_v0 }
  0x58   :  { %515 = vmatmul.mubr.f32.gmra.mrb[12].mxu1 %v34_v0  ;;  %1002 = vmatprep.mubr.msk.f32.mxu0 %vm191_vm0, %v37_v1  ;;  %v1212_v0 = vpack.c.bf16 %v698_v63, %v697_v61 }
  0x59   :  { %1020 = vmatprep.mubr.msk.f32.mxu1 %vm191_vm0, %v37_v1  ;;  %v729_v1 = vld [vmem:[%s2125_s3 + $0x150] sm:$0xff] }
  0x5a   :  { %1213 = vmatpush3.bf16.msra.mxu0 %v1212_v0 }
  0x5b   :  { %360 = vmatmul.mubr.f32.gmra.mrb[14].mxu0 %v36_v2 }
  0x5c   :  { %521 = vmatmul.mubr.f32.gmra.mrb[14].mxu1 %v36_v2  ;;  %1003 = vmatprep.mubr.msk.f32.mxu0 %vm191_vm0, %v39_v3  ;;  %v730_v2 = vld [vmem:[%s2125_s3 + $0x158] sm:$0xff] }
  0x5d   :  { %1021 = vmatprep.mubr.msk.f32.mxu1 %vm191_vm0, %v39_v3  ;;  %v1238_v3 = vpack.c.bf16 %v730_v2, %v729_v1 }
  0x5f   :  { %366 = vmatmul.mubr.f32.gmra.mrb[16].mxu0 %v38_v4  ;;  %1239 = vmatpush1.bf16.msra.mxu1 %v1238_v3 }
  0x60   :  { %527 = vmatmul.mubr.f32.gmra.mrb[16].mxu1 %v38_v4  ;;  %1004 = vmatprep.mubr.msk.f32.mxu0 %vm191_vm0, %v41_v5  ;;  %v715_v4 = vld [vmem:[%s2125_s3 + $0xe0] sm:$0xff] }
  0x61   :  { %1022 = vmatprep.mubr.msk.f32.mxu1 %vm191_vm0, %v41_v5  ;;  %1240 = vmatprep.subr.bf16.mxu1 %v1253_v55  ;;  %v716_v5 = vld [vmem:[%s2125_s3 + $0xe8] sm:$0xff] }
  0x63   :  { %372 = vmatmul.mubr.f32.gmra.mrb[18].mxu0 %v40_v6 }
  0x64   :  { %533 = vmatmul.mubr.f32.gmra.mrb[18].mxu1 %v40_v6  ;;  %1005 = vmatprep.mubr.msk.f32.mxu0 %vm191_vm0, %v43_v7  ;;  %v699_v6 = vld [vmem:[%s2125_s3 + $0x60] sm:$0xff] }
  0x65   :  { %1023 = vmatprep.mubr.msk.f32.mxu1 %vm191_vm0, %v43_v7  ;;  %v1214_v7 = vpack.c.bf16 %v716_v5, %v715_v4 }
  0x67   :  { %378 = vmatmul.mubr.f32.gmra.mrb[20].mxu0 %v42_v8  ;;  %1215 = vmatprep.subr.bf16.mxu0 %v1214_v7 }
  0x68   :  { %539 = vmatmul.mubr.f32.gmra.mrb[20].mxu1 %v42_v8  ;;  %1006 = vmatprep.mubr.msk.f32.mxu0 %vm191_vm0, %v45_v9  ;;  %v700_v8 = vld [vmem:[%s2125_s3 + $0x68] sm:$0xff] }
  0x69   :  { %1024 = vmatprep.mubr.msk.f32.mxu1 %vm191_vm0, %v45_v9  ;;  %v731_v9 = vld [vmem:[%s2125_s3 + $0x160] sm:$0xff] }
  0x6b   :  { %384 = vmatmul.mubr.f32.gmra.mrb[22].mxu0 %v44_v10 }
  0x6c   :  { %545 = vmatmul.mubr.f32.gmra.mrb[22].mxu1 %v44_v10  ;;  %1007 = vmatprep.mubr.msk.f32.mxu0 %vm191_vm0, %v47_v11  ;;  %v732_v10 = vld [vmem:[%s2125_s3 + $0x168] sm:$0xff] }
  0x6d   :  { %1025 = vmatprep.mubr.msk.f32.mxu1 %vm191_vm0, %v47_v11  ;;  %v1216_v11 = vpack.c.bf16 %v700_v8, %v699_v6 }
  0x6f   :  { %390 = vmatmul.mubr.f32.gmra.mrb[24].mxu0 %v46_v12 }
  0x70   :  { %551 = vmatmul.mubr.f32.gmra.mrb[24].mxu1 %v46_v12  ;;  %1008 = vmatprep.mubr.msk.f32.mxu0 %vm191_vm0, %v49_v13  ;;  %v1241_v12 = vpack.c.bf16 %v732_v10, %v731_v9 }
  0x71   :  { %1026 = vmatprep.mubr.msk.f32.mxu1 %vm191_vm0, %v49_v13  ;;  %1217 = vmatpush3.bf16.msra.mxu0 %v1216_v11  ;;  %v733_v13 = vld [vmem:[%s2125_s3 + $0x170] sm:$0xff] }
  0x72   :  { %1242 = vmatpush1.bf16.msra.mxu1 %v1241_v12 }
  0x73   :  { %396 = vmatmul.mubr.f32.gmra.mrb[26].mxu0 %v48_v14  ;;  %1243 = vmatprep.subr.bf16.mxu1 %v1253_v55 }
  0x74   :  { %557 = vmatmul.mubr.f32.gmra.mrb[26].mxu1 %v48_v14  ;;  %1009 = vmatprep.mubr.msk.f32.mxu0 %vm191_vm0, %v51_v15  ;;  %v734_v14 = vld [vmem:[%s2125_s3 + $0x178] sm:$0xff] }
  0x75   :  { %1027 = vmatprep.mubr.msk.f32.mxu1 %vm191_vm0, %v51_v15  ;;  %v1244_v15 = vpack.c.bf16 %v734_v14, %v733_v13 }
  0x77   :  { %402 = vmatmul.mubr.f32.gmra.mrb[28].mxu0 %v50_v16  ;;  %1245 = vmatpush1.bf16.msra.mxu1 %v1244_v15 }
  0x78   :  { %563 = vmatmul.mubr.f32.gmra.mrb[28].mxu1 %v50_v16  ;;  %1010 = vmatprep.mubr.msk.f32.mxu0 %vm191_vm0, %v53_v17  ;;  %v717_v16 = vld [vmem:[%s2125_s3 + $0xf0] sm:$0xff] }
  0x79   :  { %1028 = vmatprep.mubr.msk.f32.mxu1 %vm191_vm0, %v53_v17  ;;  %v718_v17 = vld [vmem:[%s2125_s3 + $0xf8] sm:$0xff]  ;;  %1246 = vmatprep.subr.bf16.mxu1 %v1253_v55  ;;  %v173_v55 = vsub.s32 0, %v172_v26 }
  0x7b   :  { %408 = vmatmul.mubr.f32.gmra.mrb[30].mxu0 %v52_v18  ;;  %1248 = vmatpush1.bf16.msra.mxu1 %v1247_v24  ;;  %v1929_v39 = vrot.slane %v20_v33, %v173_v55 }
  0x7c   :  { %569 = vmatmul.mubr.f32.gmra.mrb[30].mxu1 %v52_v18  ;;  %v1218_v18 = vpack.c.bf16 %v718_v17, %v717_v16 }
  0x7e   :  { %1219 = vmatprep.subr.bf16.mxu0 %v1218_v18 }
  0x7f   :  { %1221 = vmatpush3.bf16.msra.mxu0 %v1220_v22 }
 0x112   :  { %v319_v27 = vpop.f32.mrb[0].mxu0 }
 0x113   :  { %v321_v28 = vpop.f32.mrb[1].mxu0  ;;  %v480_v29 = vpop.f32.mrb[0].mxu1  ;;  %v320_v47 = vadd.f32 %v319_v27, %v1929_v39 }
 0x114   :  { %v482_v30 = vpop.f32.mrb[1].mxu1  ;;  %v322_v48 = vadd.f32 %v321_v28, %v1931_v40  ;;  %v481_v50 = vadd.f32 %v480_v29, %v1933_v42 }
 0x115   :  { %v483_v51 = vadd.f32 %v482_v30, %v1935_v43  ;;  %v575_v60 = vmax.f32 %v320_v47, 0.0 }
 0x116   :  { %v325_v32 = vpop.f32.mrb[2].mxu0  ;;  %v576_v61 = vmax.f32 %v322_v48, 0.0  ;;  %v577_v63 = vmax.f32 %v481_v50, 0.0 }
 0x117   :  { %v327_v35 = vpop.f32.mrb[3].mxu0  ;;  %v486_v37 = vpop.f32.mrb[2].mxu1  ;;  %v326_v54 = vadd.f32 %v325_v32, %v1929_v39  ;;  %v578_v0 = vmax.f32 %v483_v51, 0.0 }
 0x118   :  { %v488_v38 = vpop.f32.mrb[3].mxu1  ;;  %v328_v56 = vadd.f32 %v327_v35, %v1931_v40  ;;  %v487_v58 = vadd.f32 %v486_v37, %v1933_v42 }
 0x119   :  { %v489_v59 = vadd.f32 %v488_v38, %v1935_v43  ;;  %v579_v5 = vmax.f32 %v326_v54, 0.0 }
 0x11a   :  { %v331_v41 = vpop.f32.mrb[4].mxu0  ;;  %v580_v6 = vmax.f32 %v328_v56, 0.0  ;;  %v581_v10 = vmax.f32 %v487_v58, 0.0 }
 0x11b   :  { %v333_v44 = vpop.f32.mrb[5].mxu0  ;;  %v492_v45 = vpop.f32.mrb[4].mxu1  ;;  %v332_v1 = vadd.f32 %v331_v41, %v1929_v39  ;;  %v582_v11 = vmax.f32 %v489_v59, 0.0 }
 0x11c   :  { %v494_v46 = vpop.f32.mrb[5].mxu1  ;;  %v334_v14 = vadd.f32 %v333_v44, %v1931_v40  ;;  %v493_v15 = vadd.f32 %v492_v45, %v1933_v42 }
 0x11d   :  { %v583_v19 = vmax.f32 %v332_v1, 0.0  ;;  %v495_v30 = vadd.f32 %v494_v46, %v1935_v43 }
 0x11e   :  { %v337_v49 = vpop.f32.mrb[6].mxu0  ;;  %v584_v33 = vmax.f32 %v334_v14, 0.0  ;;  %v585_v34 = vmax.f32 %v493_v15, 0.0 }
 0x11f   :  { %v1941_v52 = vpop.f32.mrb[7].mxu0  ;;  %v1943_v53 = vpop.f32.mrb[6].mxu1  ;;  %v338_v38 = vadd.f32 %v337_v49, %v1929_v39  ;;  %v586_v58 = vmax.f32 %v495_v30, 0.0 }
 0x120   :  { %v1947_v57 = vpop.f32.mrb[7].mxu1 }
 0x122   :  { %v343_v62 = vpop.f32.mrb[8].mxu0 }
 0x123   :  { %v344_v2 = vadd.f32 %v343_v62, %v1929_v39  ;;  %v504_v3 = vpop.f32.mrb[8].mxu1  ;;  %v345_v4 = vpop.f32.mrb[9].mxu0  ;;  %v499_v62 = vadd.f32 %v1943_v53, %v1933_v42 }
 0x124   :  { %v505_v7 = vadd.f32 %v504_v3, %v1933_v42  ;;  %v346_v8 = vadd.f32 %v345_v4, %v1931_v40  ;;  %v506_v9 = vpop.f32.mrb[9].mxu1 }
 0x125   :  { %v591_v12 = vmax.f32 %v344_v2, 0.0  ;;  %v507_v13 = vadd.f32 %v506_v9, %v1935_v43  ;;  %v501_v2 = vadd.f32 %v1947_v57, %v1935_v43  ;;  %v589_v15 = vmax.f32 %v499_v62, 0.0 }
 0x126   :  { %v593_v16 = vmax.f32 %v505_v7, 0.0  ;;  %v592_v17 = vmax.f32 %v346_v8, 0.0  ;;  %v349_v18 = vpop.f32.mrb[10].mxu0 }
 0x127   :  { %v1958_v20 = vmax.f32 %v575_v60, %v591_v12  ;;  %v594_v21 = vmax.f32 %v507_v13, 0.0  ;;  %v350_v22 = vadd.f32 %v349_v18, %v1929_v39  ;;  %v510_v23 = vpop.f32.mrb[10].mxu1  ;;  %v351_v24 = vpop.f32.mrb[11].mxu0 }
 0x128   :  { %v1961_v25 = vmax.f32 %v577_v63, %v593_v16  ;;  %v1963_v26 = vmax.f32 %v576_v61, %v592_v17  ;;  %v511_v27 = vadd.f32 %v510_v23, %v1933_v42  ;;  %v352_v28 = vadd.f32 %v351_v24, %v1931_v40  ;;  %v512_v29 = vpop.f32.mrb[11].mxu1 }
 0x129   :  { %v1968_v55 = vmax.f32 %v578_v0, %v594_v21  ;;  %v595_v31 = vmax.f32 %v350_v22, 0.0  ;;  %v513_v32 = vadd.f32 %v512_v29, %v1935_v43  ;;  %v340_v61 = vadd.f32 %v1941_v52, %v1931_v40 }
 0x12a   :  { %v597_v35 = vmax.f32 %v511_v27, 0.0  ;;  %v596_v36 = vmax.f32 %v352_v28, 0.0  ;;  %v355_v37 = vpop.f32.mrb[12].mxu0 }
 0x12b   :  { %v1972_v41 = vmax.f32 %v579_v5, %v595_v31  ;;  %v598_v44 = vmax.f32 %v513_v32, 0.0  ;;  %v356_v45 = vadd.f32 %v355_v37, %v1929_v39  ;;  %v516_v47 = vpop.f32.mrb[12].mxu1  ;;  %v357_v48 = vpop.f32.mrb[13].mxu0  ;;  %v588_v14 = vmax.f32 %v340_v61, 0.0 }
 0x12c   :  { %v1975_v46 = vmax.f32 %v581_v10, %v597_v35  ;;  %v1977_v50 = vmax.f32 %v580_v6, %v596_v36  ;;  %v517_v51 = vadd.f32 %v516_v47, %v1933_v42  ;;  %v358_v54 = vadd.f32 %v357_v48, %v1931_v40  ;;  %v518_v56 = vpop.f32.mrb[13].mxu1 }
 0x12d   :  { %v1981_v59 = vmax.f32 %v582_v11, %v598_v44  ;;  %v599_v49 = vmax.f32 %v356_v45, 0.0  ;;  %v519_v60 = vadd.f32 %v518_v56, %v1935_v43  ;;  %v587_v11 = vmax.f32 %v338_v38, 0.0 }
 0x12e   :  { %v601_v63 = vmax.f32 %v517_v51, 0.0  ;;  %v600_v0 = vmax.f32 %v358_v54, 0.0  ;;  %v361_v1 = vpop.f32.mrb[14].mxu0 }
 0x12f   :  { %v1990_v3 = vmax.f32 %v583_v19, %v599_v49  ;;  %v602_v4 = vmax.f32 %v519_v60, 0.0  ;;  %v362_v5 = vadd.f32 %v361_v1, %v1929_v39  ;;  %v522_v6 = vpop.f32.mrb[14].mxu1  ;;  %v363_v7 = vpop.f32.mrb[15].mxu0  ;;  %v590_v19 = vmax.f32 %v501_v2, 0.0 }
 0x130   :  { %v1993_v8 = vmax.f32 %v585_v34, %v601_v63  ;;  %v1995_v9 = vmax.f32 %v584_v33, %v600_v0  ;;  %v523_v52 = vadd.f32 %v522_v6, %v1933_v42  ;;  %v364_v53 = vadd.f32 %v363_v7, %v1931_v40  ;;  %v524_v10 = vpop.f32.mrb[15].mxu1 }
 0x131   :  { %v1999_v12 = vmax.f32 %v586_v58, %v602_v4  ;;  %v603_v57 = vmax.f32 %v362_v5, 0.0  ;;  %v525_v13 = vadd.f32 %v524_v10, %v1935_v43 }
 0x132   :  { %v605_v16 = vmax.f32 %v523_v52, 0.0  ;;  %v604_v17 = vmax.f32 %v364_v53, 0.0  ;;  %v367_v18 = vpop.f32.mrb[16].mxu0 }
 0x133   :  { %v2002_v21 = vmax.f32 %v587_v11, %v603_v57  ;;  %v606_v22 = vmax.f32 %v525_v13, 0.0  ;;  %v369_v23 = vpop.f32.mrb[17].mxu0  ;;  %v528_v24 = vpop.f32.mrb[16].mxu1  ;;  %v368_v38 = vadd.f32 %v367_v18, %v1929_v39 }
 0x134   :  { %v2004_v27 = vmax.f32 %v589_v15, %v605_v16  ;;  %v2006_v28 = vmax.f32 %v588_v14, %v604_v17  ;;  %v530_v29 = vpop.f32.mrb[17].mxu1  ;;  %v370_v44 = vadd.f32 %v369_v23, %v1931_v40  ;;  %v529_v47 = vadd.f32 %v528_v24, %v1933_v42 }
 0x135   :  { %v2008_v30 = vmax.f32 %v590_v19, %v606_v22  ;;  %v531_v48 = vadd.f32 %v530_v29, %v1935_v43  ;;  %v607_v63 = vmax.f32 %v368_v38, 0.0 }
 0x136   :  { %v373_v31 = vpop.f32.mrb[18].mxu0  ;;  %v608_v0 = vmax.f32 %v370_v44, 0.0  ;;  %v609_v5 = vmax.f32 %v529_v47, 0.0 }
 0x137   :  { %v375_v32 = vpop.f32.mrb[19].mxu0  ;;  %v534_v33 = vpop.f32.mrb[18].mxu1  ;;  %v2015_v51 = vadd.f32 %v373_v31, %v1929_v39  ;;  %v610_v6 = vmax.f32 %v531_v48, 0.0 }
 0x138   :  { %v536_v34 = vpop.f32.mrb[19].mxu1  ;;  %v2018_v54 = vadd.f32 %v375_v32, %v1931_v40  ;;  %v2021_v56 = vadd.f32 %v534_v33, %v1933_v42 }
 0x139   :  { %v2027_v60 = vadd.f32 %v536_v34, %v1935_v43  ;;  %v611_v53 = vmax.f32 %v2015_v51, 0.0 }
 0x13a   :  { %v379_v35 = vpop.f32.mrb[20].mxu0  ;;  %v612_v10 = vmax.f32 %v2018_v54, 0.0  ;;  %v613_v11 = vmax.f32 %v2021_v56, 0.0 }
 0x13b   :  { %v381_v36 = vpop.f32.mrb[21].mxu0  ;;  %v540_v37 = vpop.f32.mrb[20].mxu1  ;;  %v2024_v49 = vadd.f32 %v379_v35, %v1929_v39  ;;  %v614_v15 = vmax.f32 %v2027_v60, 0.0 }
 0x13c   :  { %v542_v45 = vpop.f32.mrb[21].mxu1  ;;  %v2030_v1 = vadd.f32 %v381_v36, %v1931_v40  ;;  %v2033_v2 = vadd.f32 %v540_v37, %v1933_v42 }
 0x13d   :  { %v2039_v52 = vadd.f32 %v542_v45, %v1935_v43  ;;  %v615_v14 = vmax.f32 %v2024_v49, 0.0 }
 0x13e   :  { %v385_v58 = vpop.f32.mrb[22].mxu0  ;;  %v616_v22 = vmax.f32 %v2030_v1, 0.0  ;;  %v617_v23 = vmax.f32 %v2033_v2, 0.0 }
 0x13f   :  { %v387_v61 = vpop.f32.mrb[23].mxu0  ;;  %v546_v62 = vpop.f32.mrb[22].mxu1  ;;  %v2036_v7 = vadd.f32 %v385_v58, %v1929_v39  ;;  %v618_v33 = vmax.f32 %v2039_v52, 0.0 }
 0x140   :  { %v548_v4 = vpop.f32.mrb[23].mxu1  ;;  %v2045_v57 = vadd.f32 %v387_v61, %v1931_v40  ;;  %v2050_v16 = vadd.f32 %v546_v62, %v1933_v42 }
 0x141   :  { %v619_v32 = vmax.f32 %v2036_v7, 0.0  ;;  %v2062_v37 = vadd.f32 %v548_v4, %v1935_v43 }
 0x142   :  { %v391_v13 = vpop.f32.mrb[24].mxu0  ;;  %v620_v36 = vmax.f32 %v2045_v57, 0.0  ;;  %v621_v47 = vmax.f32 %v2050_v16, 0.0 }
 0x143   :  { %v392_v17 = vadd.f32 %v391_v13, %v1929_v39  ;;  %v552_v18 = vpop.f32.mrb[24].mxu1  ;;  %v393_v19 = vpop.f32.mrb[25].mxu0 }
 0x144   :  { %v553_v24 = vadd.f32 %v552_v18, %v1933_v42  ;;  %v394_v29 = vadd.f32 %v393_v19, %v1931_v40  ;;  %v554_v31 = vpop.f32.mrb[25].mxu1 }
 0x145   :  { %v623_v34 = vmax.f32 %v392_v17, 0.0  ;;  %v555_v35 = vadd.f32 %v554_v31, %v1935_v43 }
 0x146   :  { %v625_v38 = vmax.f32 %v553_v24, 0.0  ;;  %v624_v44 = vmax.f32 %v394_v29, 0.0  ;;  %v397_v45 = vpop.f32.mrb[26].mxu0 }
 0x147   :  { %v655_v48 = vmax.f32 %v607_v63, %v623_v34  ;;  %v626_v51 = vmax.f32 %v555_v35, 0.0  ;;  %v398_v54 = vadd.f32 %v397_v45, %v1929_v39  ;;  %v558_v56 = vpop.f32.mrb[26].mxu1  ;;  %v399_v58 = vpop.f32.mrb[27].mxu0 }
 0x148   :  { %v657_v60 = vmax.f32 %v609_v5, %v625_v38  ;;  %v656_v61 = vmax.f32 %v608_v0, %v624_v44  ;;  %v559_v62 = vadd.f32 %v558_v56, %v1933_v42  ;;  %v400_v13 = vadd.f32 %v399_v58, %v1931_v40  ;;  %v560_v17 = vpop.f32.mrb[27].mxu1 }
 0x149   :  { %v671_v4 = vmax.f32 %v1958_v20, %v655_v48  ;;  %v658_v18 = vmax.f32 %v610_v6, %v626_v51  ;;  %v627_v19 = vmax.f32 %v398_v54, 0.0  ;;  %v561_v24 = vadd.f32 %v560_v17, %v1935_v43 }
 0x14a   :  { %v673_v63 = vmax.f32 %v1961_v25, %v657_v60  ;;  %v629_v29 = vmax.f32 %v559_v62, 0.0  ;;  %v628_v31 = vmax.f32 %v400_v13, 0.0  ;;  %v403_v34 = vpop.f32.mrb[28].mxu0  ;;  %v672_v35 = vmax.f32 %v1963_v26, %v656_v61 }
 0x14b   :  { %v674_v0 = vmax.f32 %v1968_v55, %v658_v18  ;;  %v659_v5 = vmax.f32 %v611_v53, %v627_v19  ;;  %v630_v38 = vmax.f32 %v561_v24, 0.0  ;;  %v404_v44 = vadd.f32 %v403_v34, %v1929_v39  ;;  %v564_v45 = vpop.f32.mrb[28].mxu1  ;;  %v405_v56 = vpop.f32.mrb[29].mxu0 }
 0x14c   :  { %v661_v20 = vmax.f32 %v613_v11, %v629_v29  ;;  %v660_v6 = vmax.f32 %v612_v10, %v628_v31  ;;  %v565_v48 = vadd.f32 %v564_v45, %v1933_v42  ;;  %v406_v51 = vadd.f32 %v405_v56, %v1931_v40  ;;  %v566_v25 = vpop.f32.mrb[29].mxu1  ;;  %820 = vmatprep.mubr.f32.mxu0 %v672_v35 }
 0x14d   :  { %v662_v54 = vmax.f32 %v614_v15, %v630_v38  ;;  %v631_v58 = vmax.f32 %v404_v44, 0.0  ;;  %v567_v26 = vadd.f32 %v566_v25, %v1935_v43  ;;  %1030 = vmatprep.mubr.msk.f32.mxu1 %vm743_vm2, %v674_v0  ;;  %821 = vmatmul.mubr.f32.vlgmr.msra.gmra.mrb[32].mxu0 %v671_v4  ;;  %v675_v55 = vmax.f32 %v1972_v41, %v659_v5 }
 0x14e   :  { %v633_v53 = vmax.f32 %v565_v48, 0.0  ;;  %v632_v60 = vmax.f32 %v406_v51, 0.0  ;;  %906 = vmatmul.mubr.f32.vlgmr.msra.gmra.mrb[32].mxu1 %v673_v63  ;;  %v409_v11 = vpop.f32.mrb[30].mxu0  ;;  %v676_v10 = vmax.f32 %v1977_v50, %v660_v6  ;;  %v677_v61 = vmax.f32 %v1975_v46, %v661_v20 }
 0x14f   :  { %v678_v62 = vmax.f32 %v1981_v59, %v662_v54  ;;  %v663_v15 = vmax.f32 %v615_v14, %v631_v58  ;;  %v634_v13 = vmax.f32 %v567_v26, 0.0  ;;  %v410_v17 = vadd.f32 %v409_v11, %v1929_v39  ;;  %v570_v18 = vpop.f32.mrb[30].mxu1  ;;  %v411_v4 = vpop.f32.mrb[31].mxu0 }
 0x150   :  { %v665_v41 = vmax.f32 %v617_v23, %v633_v53  ;;  %v664_v19 = vmax.f32 %v616_v22, %v632_v60  ;;  %v571_v50 = vadd.f32 %v570_v18, %v1933_v42  ;;  %v412_v46 = vadd.f32 %v411_v4, %v1931_v40  ;;  %v572_v24 = vpop.f32.mrb[31].mxu1  ;;  %825 = vmatprep.mubr.f32.mxu0 %v676_v10 }
 0x151   :  { %v666_v59 = vmax.f32 %v618_v33, %v634_v13  ;;  %v635_v49 = vmax.f32 %v410_v17, 0.0  ;;  %v573_v39 = vadd.f32 %v572_v24, %v1935_v43  ;;  %1031 = vmatprep.mubr.msk.f32.mxu1 %vm743_vm2, %v678_v62  ;;  %826 = vmatmul.mubr.f32.gmra.mrb[34].mxu0 %v675_v55  ;;  %v679_v2 = vmax.f32 %v1990_v3, %v663_v15 }
 0x152   :  { %v637_v14 = vmax.f32 %v571_v50, 0.0  ;;  %v636_v1 = vmax.f32 %v412_v46, 0.0  ;;  %911 = vmatmul.mubr.f32.gmra.mrb[34].mxu1 %v677_v61  ;;  %v680_v42 = vmax.f32 %v1995_v9, %v664_v19  ;;  %v681_v40 = vmax.f32 %v1993_v8, %v665_v41 }
 0x153   :  { %v622_v22 = vmax.f32 %v2062_v37, 0.0  ;;  %v682_v52 = vmax.f32 %v1999_v12, %v666_v59  ;;  %v667_v23 = vmax.f32 %v619_v32, %v635_v49  ;;  %v638_v43 = vmax.f32 %v573_v39, 0.0  ;;  %v1029_v32 = vld [vmem:[%s2127_s4] ss:$0 sm:$0xff]  ;;  %s1254_s4 = smov 96  }
 0x154   :  { %v669_v33 = vmax.f32 %v621_v47, %v637_v14  ;;  %v668_v3 = vmax.f32 %v620_v36, %v636_v1  ;;  %830 = vmatprep.mubr.f32.mxu0 %v680_v42 }
 0x155   :  { %v670_v63 = vmax.f32 %v622_v22, %v638_v43  ;;  %1032 = vmatprep.mubr.msk.f32.mxu1 %vm743_vm2, %v682_v52  ;;  %831 = vmatmul.mubr.f32.gmra.mrb[36].mxu0 %v679_v2  ;;  %v683_v8 = vmax.f32 %v2002_v21, %v667_v23 }
 0x156   :  { %916 = vmatmul.mubr.f32.gmra.mrb[36].mxu1 %v681_v40  ;;  %v684_v9 = vmax.f32 %v2006_v28, %v668_v3  ;;  %v685_v12 = vmax.f32 %v2004_v27, %v669_v33 }
 0x157   :  { %v686_v7 = vmax.f32 %v2008_v30, %v670_v63 }
 0x158   :  { %835 = vmatprep.mubr.f32.mxu0 %v684_v9 }
 0x159   :  { %1033 = vmatprep.mubr.msk.f32.mxu1 %vm743_vm2, %v686_v7  ;;  %836 = vmatmul.mubr.f32.gmra.mrb[38].mxu0 %v683_v8 }
 0x15a   :  { %921 = vmatmul.mubr.f32.gmra.mrb[38].mxu1 %v685_v12 }
 0x220   :  { %v1066_v57 = vpop.f32.mrb[32].mxu0 }
 0x221   :  { %v907_v16 = vpop.f32.mrb[32].mxu1  ;;  %v1067_v36 = vpop.f32.mrb[33].mxu0 }
 0x222   :  { %v1068_v21 = vadd.f32 %v1067_v36, %v1066_v57  ;;  %v909_v37 = vpop.f32.mrb[33].mxu1 }
 0x224   :  { %v823_v47 = vadd.f32 %v1068_v21, %v1029_v32  ;;  %v1069_v28 = vpop.f32.mrb[34].mxu0 }
 0x225   :  { %v912_v29 = vpop.f32.mrb[34].mxu1  ;;  %v1070_v27 = vpop.f32.mrb[35].mxu0 }
 0x226   :  { %v1071_v31 = vadd.f32 %v1070_v27, %v1069_v28  ;;  %v914_v30 = vpop.f32.mrb[35].mxu1  ;;  %v908_v34 = vadd.f32 %v907_v16, %v823_v47 }
 0x228   :  { %v828_v35 = vadd.f32 %v1071_v31, %v1029_v32  ;;  %v1072_v0 = vpop.f32.mrb[36].mxu0  ;;  %v926_v10 = vmax.f32 %v908_v34, 0.0 }
 0x229   :  { %v917_v5 = vpop.f32.mrb[36].mxu1  ;;  %v1073_v38 = vpop.f32.mrb[37].mxu0 }
 0x22a   :  { %v1074_v44 = vadd.f32 %v1073_v38, %v1072_v0  ;;  %v919_v45 = vpop.f32.mrb[37].mxu1  ;;  %v913_v56 = vadd.f32 %v912_v29, %v828_v35 }
 0x22c   :  { %v833_v20 = vadd.f32 %v1074_v44, %v1029_v32  ;;  %v1075_v6 = vpop.f32.mrb[38].mxu0  ;;  %v927_v48 = vmax.f32 %v913_v56, 0.0 }
 0x22d   :  { %v922_v51 = vpop.f32.mrb[38].mxu1  ;;  %v1076_v25 = vpop.f32.mrb[39].mxu0 }
 0x22e   :  { %v1077_v54 = vadd.f32 %v1076_v25, %v1075_v6  ;;  %v924_v58 = vpop.f32.mrb[39].mxu1  ;;  %936 = vrot.lane.b32.xlu0 %v927_v48, %s1254_s4  ;;  %v918_v26 = vadd.f32 %v917_v5, %v833_v20 }
 0x230   :  { %v838_v55 = vadd.f32 %v1077_v54, %v1029_v32  ;;  %v928_v53 = vmax.f32 %v918_v26, 0.0 }
 0x232   :  { %938 = vrot.lane.b32.xlu0 %v928_v53, %s1254_s4  ;;  %v923_v60 = vadd.f32 %v922_v51, %v838_v55 }
 0x234   :  { %v929_v11 = vmax.f32 %v923_v60, 0.0 }
 0x236   :  { %940 = vrot.lane.b32.xlu1 %v929_v11, %s1254_s4 }
 0x23a   :  { %934 = vrot.lane.b32.xlu1 %v926_v10, %s1254_s4 }
 0x2a0   :  { %v937_v61 = vpop.permute.xlu0 %936 }
 0x2a1   :  { %v947_v62 = vmax.f32 %v927_v48, %v937_v61 }
 0x2a3   :  { %956 = vrot.lane.b32.xlu0 %v947_v62, %s1255_s6 }
 0x2a4   :  { %v939_v15 = vpop.permute.xlu0 %938 }
 0x2a5   :  { %v948_v13 = vmax.f32 %v928_v53, %v939_v15 }
 0x2a7   :  { %958 = vrot.lane.b32.xlu1 %v948_v13, %s1255_s6 }
 0x2a8   :  { %v941_v17 = vpop.permute.xlu1 %940 }
 0x2a9   :  { %v949_v18 = vmax.f32 %v929_v11, %v941_v17 }
 0x2ab   :  { %960 = vrot.lane.b32.xlu0 %v949_v18, %s1255_s6 }
 0x2ac   :  { %v935_v4 = vpop.permute.xlu1 %934 }
 0x2ad   :  { %v946_v41 = vmax.f32 %v926_v10, %v935_v4 }
 0x2af   :  { %954 = vrot.lane.b32.xlu1 %v946_v41, %s1255_s6 }
 0x315   :  { %v957_v19 = vpop.permute.xlu0 %956 }
 0x316   :  { %v967_v50 = vmax.f32 %v947_v62, %v957_v19 }
 0x318   :  { %971 = vrot.lane.b32.xlu0 %v967_v50, %s1256_s7 }
 0x319   :  { %v959_v46 = vpop.permute.xlu1 %958 }
 0x31a   :  { %v968_v24 = vmax.f32 %v948_v13, %v959_v46 }
 0x31c   :  { %975 = vrot.lane.b32.xlu1 %v968_v24, %s1255_s6 }
 0x31d   :  { %v961_v59 = vpop.permute.xlu0 %960 }
 0x31e   :  { %v969_v49 = vmax.f32 %v949_v18, %v961_v59 }
 0x320   :  { %979 = vrot.lane.b32.xlu0 %v969_v49, %s1254_s4 }
 0x321   :  { %v955_v39 = vpop.permute.xlu1 %954 }
 0x322   :  { %v966_v14 = vmax.f32 %v946_v41, %v955_v39 }
 0x38a   :  { %v972_v2 = vpop.permute.xlu0 %971 }
 0x38b   :  { %v983_v42 = vsel %vm982_vm3, %v966_v14, %v972_v2 }
 0x38e   :  { %v976_v1 = vpop.permute.xlu1 %975 }
 0x38f   :  { %v985_v40 = vsel %vm984_vm4, %v983_v42, %v976_v1 }
 0x392   :  { %v980_v22 = vpop.permute.xlu0 %979 }
 0x393   :  { %v987_v52 = vsel %vm986_vm5, %v985_v40, %v980_v22 }
 0x394   :  { %988 = vst [vmem:[%s2128_s5] sm:$0xff] %v987_v52 }

</bundles_post_ra>
